<compile_context>
chip_gen: v6e
topology: v6e:2x2x1
jax: 0.10.0
libtpu: 0.0.40
codegen_flags: <defaults>
</compile_context>

<pallas_src>
import jax
import jax.numpy as jnp
from jax.experimental import pallas as pl
from jax.experimental.pallas import tpu as pltpu


def _round_up(x, m):
    return ((x + m - 1) // m) * m


def _decoder_kernel(z_ref, w1_ref, b1_ref, w2_ref, b2_ref,
                    w3_ref, b3_ref, w4_ref, b4_ref, out_ref):
    # Whole MLP hot path runs inside the kernel on the MXU/VPU.
    # bf16 operands, f32 accumulation, ReLU on bf16 vregs.
    x = z_ref[...].astype(jnp.bfloat16)

    h = jnp.dot(x, w1_ref[...], preferred_element_type=jnp.float32) + b1_ref[...]
    h = jnp.maximum(h.astype(jnp.bfloat16), 0.0)

    h = jnp.dot(h, w2_ref[...], preferred_element_type=jnp.float32) + b2_ref[...]
    h = jnp.maximum(h.astype(jnp.bfloat16), 0.0)

    h = jnp.dot(h, w3_ref[...], preferred_element_type=jnp.float32) + b3_ref[...]
    h = jnp.maximum(h.astype(jnp.bfloat16), 0.0)

    y = jnp.dot(h, w4_ref[...], preferred_element_type=jnp.float32) + b4_ref[...]
    out_ref[...] = y.astype(out_ref.dtype)


def prepare_decoder_params(params, param_dtype=jnp.bfloat16):
    """One-time weight prep: bf16 cast + pad the last layer to a multiple of
    128 lanes.  Do this once at model-load time, NOT per forward call."""
    n_output = params["w4"].shape[1]
    n_out_pad = _round_up(n_output, 128)          # e.g. 784 -> 896
    pad_n = n_out_pad - n_output

    prep = {
        "w1": params["w1"].astype(param_dtype),
        "b1": params["b1"].astype(jnp.float32),
        "w2": params["w2"].astype(param_dtype),
        "b2": params["b2"].astype(jnp.float32),
        "w3": params["w3"].astype(param_dtype),
        "b3": params["b3"].astype(jnp.float32),
        "w4": jnp.pad(params["w4"].astype(param_dtype), ((0, 0), (0, pad_n))),
        "b4": jnp.pad(params["b4"].astype(jnp.float32), ((0, 0), (0, pad_n))),
    }
    return prep, n_output


def decoder_forward(z, prep, n_output, *, block_b=512,
                    out_dtype=jnp.bfloat16, min_grid_steps=2):
    """z: [B, dim_z] float32.  prep: output of prepare_decoder_params()."""
    B, dim_z = z.shape
    n_out_pad = prep["w4"].shape[1]

    # ---- batch tiling -------------------------------------------------------
    # * sublane-aligned tiles (multiple of 8)
    # * adaptive tile so a batch just over a multiple of block_b does not pad
    #   a whole extra tile
    # * >= min_grid_steps grid steps (when batch allows) so v7x can shard the
    #   "parallel" axis across both TensorCores
    B8 = _round_up(B, 8)
    block_b = _round_up(max(block_b, 8), 8)
    n_steps = pl.cdiv(B8, block_b)
    if B8 >= 16:
        n_steps = max(n_steps, min_grid_steps)
    bb = _round_up(pl.cdiv(B8, n_steps), 8)
    n_steps = pl.cdiv(B8, bb)
    B_pad = n_steps * bb
    grid = (n_steps,)

    z_p = z if B_pad == B else jnp.pad(z, ((0, B_pad - B), (0, 0)))

    w1, b1 = prep["w1"], prep["b1"]
    w2, b2 = prep["w2"], prep["b2"]
    w3, b3 = prep["w3"], prep["b3"]
    w4, b4 = prep["w4"], prep["b4"]

    # Constant blocks (same block every grid step): single-buffered, the
    # pipeline skips re-DMA since the block index never changes.
    def const_spec(arr):
        return pl.BlockSpec(arr.shape, lambda i: (0, 0),
                            pipeline_mode=pl.Buffered(1))

    # ---- cost estimate (helps XLA schedule around this custom call) ---------
    flops = 2 * B_pad * (dim_z * 128 + 128 * 512 + 512 * 512 + 512 * n_out_pad)
    weight_bytes = sum(int(a.size) * a.dtype.itemsize
                       for a in (w1, w2, w3, w4, b1, b2, b3, b4))
    out_itemsize = jnp.dtype(out_dtype).itemsize
    bytes_accessed = (weight_bytes + B_pad * dim_z * 4
                      + B_pad * n_out_pad * out_itemsize)
    cost = pl.CostEstimate(flops=flops, transcendentals=0,
                           bytes_accessed=bytes_accessed)

    # VMEM budget @ bb=512, bf16 out: 2x out (1.8 MiB) + weights (1.6 MiB)
    # + 2x z (0.13 MiB) + activation temps (few MiB) -> well under 32 MiB,
    # which is also safe on v7x (64 MiB physical per TC).
    out = pl.pallas_call(
        _decoder_kernel,
        out_shape=jax.ShapeDtypeStruct((B_pad, n_out_pad), out_dtype),
        grid_spec=pltpu.PrefetchScalarGridSpec(
            num_scalar_prefetch=0,
            grid=grid,
            in_specs=[
                pl.BlockSpec((bb, dim_z), lambda i: (i, 0)),
                const_spec(w1), const_spec(b1),
                const_spec(w2), const_spec(b2),
                const_spec(w3), const_spec(b3),
                const_spec(w4), const_spec(b4),
            ],
            out_specs=pl.BlockSpec((bb, n_out_pad), lambda i: (i, 0)),
        ),
        compiler_params=pltpu.CompilerParams(
            dimension_semantics=("parallel",),
            vmem_limit_bytes=32 * 1024 * 1024,
        ),
        cost_estimate=cost,
    )(z_p, w1, b1, w2, b2, w3, b3, w4, b4)

    return out[:B, :n_output]


def init_decoder_params(key, dim_z=32, n_output=784):
    """Deterministic synthetic init; shapes match the torch module's Linears,
    but weights are stored as [in, out] (transposed) for the kernel."""
    sizes = [(dim_z, 128), (128, 512), (512, 512), (512, n_output)]
    params = {}
    for idx, (fan_in, fan_out) in enumerate(sizes, start=1):
        key, kw, kb = jax.random.split(key, 3)
        bound = 1.0 / jnp.sqrt(fan_in)
        params[f"w{idx}"] = jax.random.uniform(
            kw, (fan_in, fan_out), jnp.float32, -bound, bound)
        params[f"b{idx}"] = jax.random.uniform(
            kb, (1, fan_out), jnp.float32, -bound, bound)
    return params


def decoder_reference(z, params, param_dtype=jnp.bfloat16):
    """Pure-JAX reference using the same numerics (bf16 operands, f32 accum,
    ReLU on bf16).  Output in f32 for comparison."""
    def layer(x, w, b, relu=True):
        y = jnp.dot(x.astype(param_dtype), w.astype(param_dtype),
                    preferred_element_type=jnp.float32) + b.astype(jnp.float32)
        if relu:
            y = jnp.maximum(y.astype(param_dtype), 0.0).astype(jnp.float32)
        return y

    h = layer(z, params["w1"], params["b1"])
    h = layer(h, params["w2"], params["b2"])
    h = layer(h, params["w3"], params["b3"])
    return layer(h, params["w4"], params["b4"], relu=False)


if __name__ == "__main__":
    key = jax.random.PRNGKey(0)
    dim_z, n_output, batch = 32, 784, 64

    key, kz = jax.random.split(key)
    z = jax.random.normal(kz, (batch, dim_z), jnp.float32)
    params = init_decoder_params(key, dim_z=dim_z, n_output=n_output)

    # One-time weight prep (bf16 cast + lane padding) outside the hot path.
    prep, n_out = prepare_decoder_params(params)

    out = decoder_forward(z, prep, n_out)
    out = jax.block_until_ready(out)

    ref = decoder_reference(z, params)
    assert out.shape == (batch, n_output)
    out_f32 = out.astype(jnp.float32)
    assert jnp.allclose(out_f32, ref, atol=3e-2, rtol=3e-2), \
        float(jnp.max(jnp.abs(out_f32 - ref)))

    print("KERNEL_OK")
</pallas_src>

<mosaic_0001>
module attributes {stable_mosaic.version = 11 : i64} {
  func.func @_decoder_kernel(%arg0: i32, %arg1: memref<32x32xf32, #tpu.memory_space<vmem>>, %arg2: memref<32x128xbf16, #tpu.memory_space<vmem>>, %arg3: memref<1x128xf32, #tpu.memory_space<vmem>>, %arg4: memref<128x512xbf16, #tpu.memory_space<vmem>>, %arg5: memref<1x512xf32, #tpu.memory_space<vmem>>, %arg6: memref<512x512xbf16, #tpu.memory_space<vmem>>, %arg7: memref<1x512xf32, #tpu.memory_space<vmem>>, %arg8: memref<512x896xbf16, #tpu.memory_space<vmem>>, %arg9: memref<1x896xf32, #tpu.memory_space<vmem>>, %arg10: memref<32x896xbf16, #tpu.memory_space<vmem>>) attributes {dimension_semantics = [#tpu.dimension_semantics<parallel>], iteration_bounds = array<i64: 2>, scalar_prefetch = 0 : i64, scratch_operands = 0 : i64, tpu.core_type = #tpu.core_type<tc>, window_params = [{transform_indices = @transform_0, window_bounds = array<i64: 32, 32>}, {pipeline_mode = #tpu.pipeline_mode<synchronous>, transform_indices = @transform_1, window_bounds = array<i64: 32, 128>}, {pipeline_mode = #tpu.pipeline_mode<synchronous>, transform_indices = @transform_2, window_bounds = array<i64: 1, 128>}, {pipeline_mode = #tpu.pipeline_mode<synchronous>, transform_indices = @transform_3, window_bounds = array<i64: 128, 512>}, {pipeline_mode = #tpu.pipeline_mode<synchronous>, transform_indices = @transform_4, window_bounds = array<i64: 1, 512>}, {pipeline_mode = #tpu.pipeline_mode<synchronous>, transform_indices = @transform_5, window_bounds = array<i64: 512, 512>}, {pipeline_mode = #tpu.pipeline_mode<synchronous>, transform_indices = @transform_6, window_bounds = array<i64: 1, 512>}, {pipeline_mode = #tpu.pipeline_mode<synchronous>, transform_indices = @transform_7, window_bounds = array<i64: 512, 896>}, {pipeline_mode = #tpu.pipeline_mode<synchronous>, transform_indices = @transform_8, window_bounds = array<i64: 1, 896>}, {transform_indices = @transform_9, window_bounds = array<i64: 32, 896>}]} {
    %c0 = arith.constant 0 : index
    %c0_0 = arith.constant 0 : index
    %0 = vector.load %arg1[%c0, %c0_0] : memref<32x32xf32, #tpu.memory_space<vmem>>, vector<32x32xf32>
    %1 = arith.truncf %0 : vector<32x32xf32> to vector<32x32xbf16>
    %c0_1 = arith.constant 0 : index
    %c0_2 = arith.constant 0 : index
    %2 = vector.load %arg2[%c0_1, %c0_2] : memref<32x128xbf16, #tpu.memory_space<vmem>>, vector<32x128xbf16>
    %cst = arith.constant dense<0.000000e+00> : vector<32x128xf32>
    %3 = tpu.matmul %1, %2, %cst {dimension_numbers = #tpu.dot_dimension_numbers<[1], [0], [0], [1], [0, 0, 1, 1], [], []>} : vector<32x32xbf16>, vector<32x128xbf16>, vector<32x128xf32> -> vector<32x128xf32>
    %c0_3 = arith.constant 0 : index
    %c0_4 = arith.constant 0 : index
    %4 = vector.load %arg3[%c0_3, %c0_4] : memref<1x128xf32, #tpu.memory_space<vmem>>, vector<1x128xf32>
    %5 = vector.broadcast %4 : vector<1x128xf32> to vector<32x128xf32>
    %6 = arith.addf %3, %5 : vector<32x128xf32>
    %7 = arith.truncf %6 : vector<32x128xf32> to vector<32x128xbf16>
    %cst_5 = arith.constant 0.000000e+00 : bf16
    %8 = vector.broadcast %cst_5 : bf16 to vector<32x128xbf16>
    %9 = arith.maximumf %7, %8 : vector<32x128xbf16>
    %c0_6 = arith.constant 0 : index
    %c0_7 = arith.constant 0 : index
    %10 = vector.load %arg4[%c0_6, %c0_7] : memref<128x512xbf16, #tpu.memory_space<vmem>>, vector<128x512xbf16>
    %cst_8 = arith.constant dense<0.000000e+00> : vector<32x512xf32>
    %11 = tpu.matmul %9, %10, %cst_8 {dimension_numbers = #tpu.dot_dimension_numbers<[1], [0], [0], [1], [0, 0, 1, 1], [], []>} : vector<32x128xbf16>, vector<128x512xbf16>, vector<32x512xf32> -> vector<32x512xf32>
    %c0_9 = arith.constant 0 : index
    %c0_10 = arith.constant 0 : index
    %12 = vector.load %arg5[%c0_9, %c0_10] : memref<1x512xf32, #tpu.memory_space<vmem>>, vector<1x512xf32>
    %13 = vector.broadcast %12 : vector<1x512xf32> to vector<32x512xf32>
    %14 = arith.addf %11, %13 : vector<32x512xf32>
    %15 = arith.truncf %14 : vector<32x512xf32> to vector<32x512xbf16>
    %cst_11 = arith.constant 0.000000e+00 : bf16
    %16 = vector.broadcast %cst_11 : bf16 to vector<32x512xbf16>
    %17 = arith.maximumf %15, %16 : vector<32x512xbf16>
    %c0_12 = arith.constant 0 : index
    %c0_13 = arith.constant 0 : index
    %18 = vector.load %arg6[%c0_12, %c0_13] : memref<512x512xbf16, #tpu.memory_space<vmem>>, vector<512x512xbf16>
    %cst_14 = arith.constant dense<0.000000e+00> : vector<32x512xf32>
    %19 = tpu.matmul %17, %18, %cst_14 {dimension_numbers = #tpu.dot_dimension_numbers<[1], [0], [0], [1], [0, 0, 1, 1], [], []>} : vector<32x512xbf16>, vector<512x512xbf16>, vector<32x512xf32> -> vector<32x512xf32>
    %c0_15 = arith.constant 0 : index
    %c0_16 = arith.constant 0 : index
    %20 = vector.load %arg7[%c0_15, %c0_16] : memref<1x512xf32, #tpu.memory_space<vmem>>, vector<1x512xf32>
    %21 = vector.broadcast %20 : vector<1x512xf32> to vector<32x512xf32>
    %22 = arith.addf %19, %21 : vector<32x512xf32>
    %23 = arith.truncf %22 : vector<32x512xf32> to vector<32x512xbf16>
    %cst_17 = arith.constant 0.000000e+00 : bf16
    %24 = vector.broadcast %cst_17 : bf16 to vector<32x512xbf16>
    %25 = arith.maximumf %23, %24 : vector<32x512xbf16>
    %c0_18 = arith.constant 0 : index
    %c0_19 = arith.constant 0 : index
    %26 = vector.load %arg8[%c0_18, %c0_19] : memref<512x896xbf16, #tpu.memory_space<vmem>>, vector<512x896xbf16>
    %cst_20 = arith.constant dense<0.000000e+00> : vector<32x896xf32>
    %27 = tpu.matmul %25, %26, %cst_20 {dimension_numbers = #tpu.dot_dimension_numbers<[1], [0], [0], [1], [0, 0, 1, 1], [], []>} : vector<32x512xbf16>, vector<512x896xbf16>, vector<32x896xf32> -> vector<32x896xf32>
    %c0_21 = arith.constant 0 : index
    %c0_22 = arith.constant 0 : index
    %28 = vector.load %arg9[%c0_21, %c0_22] : memref<1x896xf32, #tpu.memory_space<vmem>>, vector<1x896xf32>
    %29 = vector.broadcast %28 : vector<1x896xf32> to vector<32x896xf32>
    %30 = arith.addf %27, %29 : vector<32x896xf32>
    %31 = arith.truncf %30 : vector<32x896xf32> to vector<32x896xbf16>
    %c0_23 = arith.constant 0 : index
    %c0_24 = arith.constant 0 : index
    %32 = vector.load %arg10[%c0_23, %c0_24] : memref<32x896xbf16, #tpu.memory_space<vmem>>, vector<32x896xbf16>
    tpu.vector_store %arg10[%c0_23, %c0_24], %31 {strides = array<i32>} : memref<32x896xbf16, #tpu.memory_space<vmem>>, vector<32x896xbf16>,
    return
  }
  func.func @transform_0(%arg0: i32) -> (i32, i32) {
    %c0_i32 = arith.constant 0 : i32
    %c0_i32_0 = arith.constant 0 : i32
    return %arg0, %c0_i32 : i32, i32
  }
  func.func @transform_1(%arg0: i32) -> (i32, i32) {
    %c0_i32 = arith.constant 0 : i32
    %c0_i32_0 = arith.constant 0 : i32
    %c0_i32_1 = arith.constant 0 : i32
    return %c0_i32, %c0_i32_0 : i32, i32
  }
  func.func @transform_2(%arg0: i32) -> (i32, i32) {
    %c0_i32 = arith.constant 0 : i32
    %c0_i32_0 = arith.constant 0 : i32
    %c0_i32_1 = arith.constant 0 : i32
    return %c0_i32, %c0_i32_0 : i32, i32
  }
  func.func @transform_3(%arg0: i32) -> (i32, i32) {
    %c0_i32 = arith.constant 0 : i32
    %c0_i32_0 = arith.constant 0 : i32
    %c0_i32_1 = arith.constant 0 : i32
    return %c0_i32, %c0_i32_0 : i32, i32
  }
  func.func @transform_4(%arg0: i32) -> (i32, i32) {
    %c0_i32 = arith.constant 0 : i32
    %c0_i32_0 = arith.constant 0 : i32
    %c0_i32_1 = arith.constant 0 : i32
    return %c0_i32, %c0_i32_0 : i32, i32
  }
  func.func @transform_5(%arg0: i32) -> (i32, i32) {
    %c0_i32 = arith.constant 0 : i32
    %c0_i32_0 = arith.constant 0 : i32
    %c0_i32_1 = arith.constant 0 : i32
    return %c0_i32, %c0_i32_0 : i32, i32
  }
  func.func @transform_6(%arg0: i32) -> (i32, i32) {
    %c0_i32 = arith.constant 0 : i32
    %c0_i32_0 = arith.constant 0 : i32
    %c0_i32_1 = arith.constant 0 : i32
    return %c0_i32, %c0_i32_0 : i32, i32
  }
  func.func @transform_7(%arg0: i32) -> (i32, i32) {
    %c0_i32 = arith.constant 0 : i32
    %c0_i32_0 = arith.constant 0 : i32
    %c0_i32_1 = arith.constant 0 : i32
    return %c0_i32, %c0_i32_0 : i32, i32
  }
  func.func @transform_8(%arg0: i32) -> (i32, i32) {
    %c0_i32 = arith.constant 0 : i32
    %c0_i32_0 = arith.constant 0 : i32
    %c0_i32_1 = arith.constant 0 : i32
    return %c0_i32, %c0_i32_0 : i32, i32
  }
  func.func @transform_9(%arg0: i32) -> (i32, i32) {
    %c0_i32 = arith.constant 0 : i32
    %c0_i32_0 = arith.constant 0 : i32
    return %arg0, %c0_i32 : i32, i32
  }
}

</mosaic_0001>

<bundles_post_ra>
// kernel: tpu_custom_call.1
= control target key start
LH: loop header
LB: loop body
LE: loop exit
PB: predicated region body
PF: predicated region fallthrough
CT: control target
= control target key end

     0   :  { %14 = vsyncpa [#allocation3], 0  ;;  %s5582_s0 = inlined_call_operand.vmem [shape: f32[64,32], index: 0, kind: input, shape index: {}]   ;;  %s5583_s1 = inlined_call_operand.vmem [shape: bf16[32,128], index: 1, kind: input, shape index: {}]   ;;  %s5584_s2 = inlined_call_operand.vmem [shape: f32[1,128], index: 2, kind: input, shape index: {}]   ;;  %s5585_s3 = inlined_call_operand.hbm [shape: bf16[128,512], index: 3, kind: input, shape index: {}]   ;;  %s5586_s4 = inlined_call_operand.vmem [shape: f32[1,512], index: 4, kind: input, shape index: {}]   ;;  %s5587_s5 = inlined_call_operand.hbm [shape: bf16[512,512], index: 5, kind: input, shape index: {}]   ;;  %s5588_s6 = inlined_call_operand.vmem [shape: f32[1,512], index: 6, kind: input, shape index: {}]   ;;  %s5589_s7 = inlined_call_operand.hbm [shape: bf16[512,896], index: 7, kind: input, shape index: {}]   ;;  %s5590_s8 = inlined_call_operand.vmem [shape: f32[1,896], index: 8, kind: input, shape index: {}]   ;;  %s5591_s9 = inlined_call_operand.hbm [shape: bf16[64,896], index: 9, kind: output, shape index: {}]  }
   0x1   :  { %15 = vsyncpa [#allocation6], 0 }
   0x2   :  { %16 = vsyncpa [#allocation4], 0 }
   0x3   :  { %18 = vsyncpa [#allocation4 + $0x1], 0  ;;  %s5251_s30 = smov 0   ;;  %s5253_s10 = smov 0  }
   0x4   :  { %s5255_s11 = smov 0   ;;  %s5257_s12 = smov 0  }
   0x5 LB: > { %s5272_s13 = sadd.s32 4294967295, %s5188_s12   ;;  %s3895_s14 = sadd.s32 4294967294, %s5188_s12   ;;  %s5188_s12 = sphi %s5257_s12, %s5607_s12   ;;  %s5184_s11 = sphi %s5255_s11, %s5606_s11   ;;  %s5180_s10 = sphi %s5253_s10, %s5605_s10   ;;  %s5176_s30 = sphi %s5251_s30, %s5604_s30  }
   0x6   : > { %s5276_s15 = sadd.s32 1, %s5188_s12   ;;  %s225_s16 = sadd.s32 1, %s5184_s11 }
   0x7   : > { %s222_s17 = ssub.s32 %s5188_s12, %s5276_s15  ;;  %p235_p0 = scmp.ne.s32.totalorder %s5184_s11, %s5180_s10 }
   0x8   : > { %p223_p1 = scmp.eq.s32.totalorder %s222_s17, 0  ;;  %p236_p2 = scmp.eq.s32.totalorder %s5272_s13, 1 }
   0x9   : > { %p241_p3 = scmp.ne.s32.totalorder %s5180_s10, %s5176_s30  ;;  %p242_p4 = scmp.eq.s32.totalorder %s3895_s14, 1 }
   0xa   : > { %s5287_s18 = scalar_select %p223_p1, %s5184_s11, %s225_s16  }
   0xb   : > { %p5289_p5 = por %p236_p2, %p235_p0  ;;  %p5293_p6 = por %p242_p4, %p241_p3 }
   0xc   : > { %p3896_p7 = scmp.ge.s32.totalorder %s5188_s12, 1  ;;  %p249_p8 = scmp.lt.s32.totalorder %s5188_s12, 3 }
   0xd   : > { %s5594_s19 = scalar_select %p5289_p5, 1, 0 }
   0xe   : > { %s5595_s20 = scalar_select %p5293_p6, 1, 0 }
   0xf   : > { %p5592_p9 = scmp.eq.s32.totalorder %s5272_s13, 0  ;;  %p5300_p10 = pnand %p3896_p7, %p249_p8 }
  0x10   : > { %s5190_s22 = smov [#allocation5]   ;;  %s5191_s25 = smov [#allocation2]  }
  0x11   : > { %p4417_p11 = pneg %p5300_p10  ;;  %s283_s23 = sshll.u32 %s5190_s22, 4  ;;  %s284_s23 = int_to_ptr.vmem [resolvable:$true] %s283_s23 }
  0x12   : > { %s267_s26 = sshll.u32 %s5191_s25, 4  ;;  %s5192_s27 = smov [#allocation7]   ;;  %s268_s26 = int_to_ptr.vmem [resolvable:$true] %s267_s26 }
  0x13   : > { %p5308_p12 = pnand %p5592_p9, %p4417_p11  ;;  %s299_s28 = sshll.u32 %s5192_s27, 4  ;;  %s300_s28 = int_to_ptr.vmem [resolvable:$true] %s299_s28 }
  0x14   : > { %s5053_s29 = scalar_lea.vmem %s284_s23, 16384  ;;  %p5061_p3 = scmp.lt.s32.totalorder %s284_s23, %s284_s23 }
  0x15   : > { %p5044_p13 = pneg %p5308_p12  ;;  %p5054_p0 = scmp.ne.s32.totalorder %s284_s23, %s5053_s29 }
  0x16   : > { %p5062_p4 = scmp.lt.s32.totalorder %s5053_s29, %s5053_s29 }
  0x17   : > { %p5056_p1 = pnand %p5054_p0, %p5044_p13 }
  0x18   : > { %p5063_p7 = por %p5062_p4, %p5061_p3 }
  0x19   : > { %p5057_p2 = pneg %p5056_p1 }
  0x1b   : > { %p5064_p8 = pnand %p5063_p7, %p5057_p2 }
  0x1d   : > { %5067 = shalt.err (!%p5064_p8)
}
  0x1e   : > { %s5193_s14 = smov 256   ;;  %s5194_s16 = smov 16  }
  0x1f   : > { %4423 = dma.hbm_to_vmem [thread:$0]  (!%p5308_p12), %s5587_s5, 16384, %s284_s23, [#allocation6], %s5193_s14, %s5193_s14, %s5194_s16  }
  0x20   : > { %s5079_s25 = scalar_lea.vmem %s268_s26, 4096  ;;  %p5087_p9 = scmp.lt.s32.totalorder %s268_s26, %s268_s26 }
  0x21   : > { %p5080_p11 = scmp.ne.s32.totalorder %s268_s26, %s5079_s25  ;;  %p5088_p6 = scmp.lt.s32.totalorder %s5079_s25, %s5079_s25 }
  0x23   : > { %p5082_p0 = pnand %p5080_p11, %p5044_p13  ;;  %p5089_p3 = por %p5088_p6, %p5087_p9 }
  0x25   : > { %p5083_p1 = pneg %p5082_p0 }
  0x27   : > { %p5090_p2 = pnand %p5089_p3, %p5083_p1 }
  0x29   : > { %5093 = shalt.err (!%p5090_p2)
}
  0x2a   : > { %4420 = dma.hbm_to_vmem [thread:$0]  (!%p5308_p12), %s5585_s3, 4096, %s268_s26, [#allocation3], %s5193_s14, %s5193_s14, %s5194_s16  }
  0x2b   : > { %s5105_s23 = scalar_lea.vmem %s300_s28, 28672  ;;  %p5113_p11 = scmp.lt.s32.totalorder %s300_s28, %s300_s28 }
  0x2c   : > { %p5106_p4 = scmp.ne.s32.totalorder %s300_s28, %s5105_s23  ;;  %p5114_p0 = scmp.lt.s32.totalorder %s5105_s23, %s5105_s23 }
  0x2e   : > { %p5108_p7 = pnand %p5106_p4, %p5044_p13  ;;  %p5115_p5 = por %p5114_p0, %p5113_p11 }
  0x30   : > { %p5109_p8 = pneg %p5108_p7 }
  0x32   : > { %p5116_p6 = pnand %p5115_p5, %p5109_p8 }
  0x34   : > { %5119 = shalt.err (!%p5116_p6)
}
  0x35   : > { %s5195_s17 = smov 448   ;;  %s5196_s22 = smov 28  }
  0x36   : > { %4426 = dma.hbm_to_vmem [thread:$0]  (!%p5308_p12), %s5589_s7, 28672, %s300_s28, [#allocation6], %s5195_s17, %s5195_s17, %s5196_s22  }
  0x37   : > { %327 = sbr.rel (%p5300_p10) target bundleno = 1145 (0x479), region = 56  ;;  %p5598_p9 = scmp.eq.s32.totalorder (!%p5300_p10), %s5272_s13, 0 }
  0x3c   : > { %5163 = dma.done.wait (%p5598_p9), [#allocation3], 4096   ;;  %p5599_p13 = pmov %p5598_p9 }
  0x3d   : > { %p5600_p5 = pmov %p5598_p9 }
  0x3e   : > { %5165 = vsyncadd (%p5599_p13), [#allocation3], 4294963200 }
  0x3f   : > { %5167 = dma.done.wait (%p5600_p5), [#allocation6], 45056   ;;  %p5601_p1 = pmov %p5600_p5 }
  0x40   : > { %s3905_s24 = sshll.u32 %s5272_s13, 2  ;;  %v4480_v0 = vld [vmem:[%s5583_s1 + $0x8] sm:$0xff]   ;;  %v4481_v1 = vld [vmem:[%s5583_s1] sm:$0xff]   ;;  %vm408_vm0 = vcmask 261120   ;;  %v5197_v40 = vmov 0   ;;  %s368_s16 = sand.u32 1, %s5180_s10  }
  0x41   : > { %5169 = vsyncadd (%p5601_p1), [#allocation6], 4294922240  ;;  %p372_p3 = scmp.lt.s32.totalorder %s3905_s24, 7  ;;  %4393 = vmatprep.subr.bf16.mxu0 %v4480_v0  ;;  %v4482_v7 = vld [vmem:[#allocation2 + $0xe4] ss:$16 sps:$4 sm:$0xff]   ;;  %714 = vmatprep.mubr.bf16.mxu1 %v5197_v40  ;;  %s4401_s29 = smul.u32 112, %s368_s16 }
  0x42   : > { %4394 = vmatpush3.bf16.msra.mxu0 %v4480_v0  ;;  %v4486_v8 = vld [vmem:[#allocation2 + $0xec] ss:$16 sps:$4 sm:$0xff]   ;;  %v4487_v9 = vld [vmem:[#allocation2 + $0xe0] ss:$16 sps:$4 sm:$0xff]   ;;  %682 = vmatprep.subr.bf16.mxu1 %v4482_v7  ;;  %v4488_v11 = vld [vmem:[#allocation2 + $0xc4] ss:$16 sps:$4 sm:$0xff]  }
  0x43   : > { %s5609_s24 = smov (!%p372_p3, %s3905_s24), 7  ;;  %4395 = vmatprep.subr.bf16.mxu0 %v4481_v1  ;;  %v4484_v12 = vld [vmem:[#allocation2 + $0xe8] ss:$16 sps:$4 sm:$0xff]   ;;  %683 = vmatpush1.bf16.msra.mxu1 %v4487_v9  ;;  %v4492_v13 = vld [vmem:[#allocation2 + $0xcc] ss:$16 sps:$4 sm:$0xff]   ;;  %s5503_s23 = scalar_lea.vmem [#allocation8], %s4401_s29 }
  0x44   : > { %s3906_s26 = sshll.u32 %s5609_s24, 3  ;;  %684 = vmatprep.subr.bf16.mxu1 %v4488_v11  ;;  %v4493_v14 = vld [vmem:[#allocation2 + $0xc0] ss:$16 sps:$4 sm:$0xff]   ;;  %v4494_v15 = vld [vmem:[#allocation2 + $0xa4] ss:$16 sps:$4 sm:$0xff]   ;;  %s4402_s17 = smul.u32 1792, %s5272_s13 }
  0x45   : > { %s375_s14 = scalar_lea.vmem %s5582_s0, %s3906_s26  ;;  %v4490_v16 = vld [vmem:[#allocation2 + $0xc8] ss:$16 sps:$4 sm:$0xff]   ;;  %v4498_v17 = vld [vmem:[#allocation2 + $0xac] ss:$16 sps:$4 sm:$0xff]   ;;  %v4499_v18 = vld [vmem:[#allocation2 + $0xa0] ss:$16 sps:$4 sm:$0xff]  }
  0x46   : > { %v379_v2 = vld [vmem:[%s375_s14] sm:$0xff]  ;;  %v380_v3 = vld [vmem:[%s375_s14 + $0x8] sm:$0xff]  ;;  %v381_v4 = vld [vmem:[%s375_s14 + $0x10] sm:$0xff]  ;;  %4396 = vmatpush3.bf16.msra.mxu0 %v4481_v1  ;;  %s3802_s22 = sshll.u32 %s5503_s23, 4  ;;  %s5535_s24 = scalar_lea.hbm %s5591_s9, %s4402_s17  ;;  %s5537_s22 = int_to_ptr.vmem [resolvable:$true] %s3802_s22 }
  0x47   : > { %v383_v5 = vpack.c.bf16 %v380_v3, %v379_v2  ;;  %v382_v6 = vld [vmem:[%s375_s14 + $0x18] sm:$0xff]  ;;  %735 = vmatprep.subr.bf16.mxu0 %v4486_v8  ;;  %685 = vmatpush1.bf16.msra.mxu1 %v4493_v14  ;;  %v4500_v19 = vld [vmem:[#allocation2 + $0x84] ss:$16 sps:$4 sm:$0xff]   ;;  %v4505_v21 = vld [vmem:[#allocation2 + $0x80] ss:$16 sps:$4 sm:$0xff]   ;;  %s5542_s13 = scalar_lea.sflag [#allocation4], %s368_s16 }
  0x48   : > { %v384_v10 = vpack.c.bf16 %v382_v6, %v381_v4  ;;  %686 = vmatprep.subr.bf16.mxu1 %v4494_v15  ;;  %v4496_v20 = vld [vmem:[#allocation2 + $0xa8] ss:$16 sps:$4 sm:$0xff]   ;;  %v4504_v22 = vld [vmem:[#allocation2 + $0x8c] ss:$16 sps:$4 sm:$0xff]   ;;  %v4506_v23 = vld [vmem:[#allocation2 + $0x64] ss:$16 sps:$4 sm:$0xff]  }
  0x49   : > { %4397 = vmatprep.mubr.msk.bf16.mxu0 %vm408_vm0, %v383_v5  ;;  %v4502_v24 = vld [vmem:[#allocation2 + $0x88] ss:$16 sps:$4 sm:$0xff]   ;;  %v4511_v25 = vld [vmem:[#allocation2 + $0x60] ss:$16 sps:$4 sm:$0xff]   ;;  %v4510_v26 = vld [vmem:[#allocation2 + $0x6c] ss:$16 sps:$4 sm:$0xff]  }
  0x4a   : > { %4398 = vmatmul.mubr.msk.bf16.vlgmr.msra.gmra.mxu0 %vm408_vm0, %v384_v10  ;;  %v4508_v27 = vld [vmem:[#allocation2 + $0x68] ss:$16 sps:$4 sm:$0xff]   ;;  %v4512_v28 = vld [vmem:[#allocation2 + $0x44] ss:$16 sps:$4 sm:$0xff]   ;;  %v4516_v29 = vld [vmem:[#allocation2 + $0x4c] ss:$16 sps:$4 sm:$0xff]  }
  0x4b   : > { %736 = vmatpush1.bf16.msra.mxu0 %v4484_v12  ;;  %687 = vmatpush1.bf16.msra.mxu1 %v4499_v18  ;;  %v4514_v30 = vld [vmem:[#allocation2 + $0x48] ss:$16 sps:$4 sm:$0xff]   ;;  %v4517_v31 = vld [vmem:[#allocation2 + $0x40] ss:$16 sps:$4 sm:$0xff]   ;;  %v4518_v32 = vld [vmem:[#allocation2 + $0x24] ss:$16 sps:$4 sm:$0xff]  }
  0x4c   : > { %737 = vmatprep.subr.bf16.mxu0 %v4492_v13  ;;  %688 = vmatprep.subr.bf16.mxu1 %v4500_v19  ;;  %v4522_v33 = vld [vmem:[#allocation2 + $0x2c] ss:$16 sps:$4 sm:$0xff]   ;;  %v4520_v34 = vld [vmem:[#allocation2 + $0x28] ss:$16 sps:$4 sm:$0xff]   ;;  %v4523_v35 = vld [vmem:[#allocation2 + $0x20] ss:$16 sps:$4 sm:$0xff]  }
  0x4d   : > { %v4524_v36 = vld [vmem:[#allocation2 + $0x4] ss:$16 sps:$4 sm:$0xff]   ;;  %v4528_v37 = vld [vmem:[#allocation2 + $0xc] ss:$16 sps:$4 sm:$0xff]   ;;  %v4526_v38 = vld [vmem:[#allocation2 + $0x8] ss:$16 sps:$4 sm:$0xff]   ;;  %767 = vmatprep.mubr.bf16.mxu0 %v5197_v40 }
  0x4e   : > { %v4529_v39 = vld [vmem:[#allocation2] ss:$16 sps:$4 sm:$0xff]   ;;  %v4532_v41 = vld [vmem:[#allocation5 + $0xe4] ss:$16 sps:$4 sm:$0xff]   ;;  %s5120_s26 = scalar_lea.vmem %s5537_s22, 1792  ;;  %p5602_p12 = scmp.ne.s32.totalorder %s5594_s19, 0 }
  0x4f   : > { %738 = vmatpush1.bf16.msra.mxu0 %v4490_v16  ;;  %689 = vmatpush1.bf16.msra.mxu1 %v4505_v21  ;;  %v4535_v42 = vld [vmem:[#allocation5 + $0x2e4] ss:$16 sps:$4 sm:$0xff]   ;;  %v3907_v46 = vld [vmem:[%s5584_s2] ss:$0 sm:$0xff]  ;;  %p5121_p10 = scmp.ne.s32.totalorder %s5537_s22, %s5120_s26  ;;  %s5198_s28 = smov [#allocation8]  }
  0x50   : > { %739 = vmatprep.subr.bf16.mxu0 %v4498_v17  ;;  %690 = vmatprep.subr.bf16.mxu1 %v4506_v23  ;;  %v4530_v53 = vld [vmem:[#allocation5 + $0xe0] ss:$16 sps:$4 sm:$0xff]   ;;  %v4538_v55 = vld [vmem:[#allocation5 + $0xc4] ss:$16 sps:$4 sm:$0xff]   ;;  %s5124_s21 = sshll.u32 %s5198_s28, 4  ;;  %s5125_s21 = int_to_ptr.vmem [resolvable:$false] %s5124_s21 }
  0x51   : > { %v4533_v54 = vld [vmem:[#allocation5 + $0x2e0] ss:$16 sps:$4 sm:$0xff]   ;;  %v4541_v56 = vld [vmem:[#allocation5 + $0x2c4] ss:$16 sps:$4 sm:$0xff]   ;;  %p5122_p2 = pnand %p5121_p10, %p5602_p12  ;;  %s5126_s14 = scalar_lea.vmem %s5125_s21, 3584 }
  0x52   : > { %v4536_v59 = vld [vmem:[#allocation5 + $0xc0] ss:$16 sps:$4 sm:$0xff]   ;;  %v4544_v61 = vld [vmem:[#allocation5 + $0xa4] ss:$16 sps:$4 sm:$0xff]   ;;  %p5127_p7 = scmp.lt.s32.totalorder %s5537_s22, %s5125_s21  ;;  %p5128_p8 = scmp.lt.s32.totalorder %s5126_s14, %s5120_s26 }
  0x53   : > { %740 = vmatpush1.bf16.msra.mxu0 %v4496_v20  ;;  %691 = vmatpush1.bf16.msra.mxu1 %v4511_v25  ;;  %v4539_v60 = vld [vmem:[#allocation5 + $0x2c0] ss:$16 sps:$4 sm:$0xff]   ;;  %v4547_v62 = vld [vmem:[#allocation5 + $0x2a4] ss:$16 sps:$4 sm:$0xff]   ;;  %p5123_p4 = pneg %p5122_p2 }
  0x54   : > { %741 = vmatprep.subr.bf16.mxu0 %v4504_v22  ;;  %692 = vmatprep.subr.bf16.mxu1 %v4512_v28  ;;  %v4542_v0 = vld [vmem:[#allocation5 + $0xa0] ss:$16 sps:$4 sm:$0xff]   ;;  %v4550_v2 = vld [vmem:[#allocation5 + $0x84] ss:$16 sps:$4 sm:$0xff]   ;;  %p5129_p11 = por %p5128_p8, %p5127_p7 }
  0x55   : > { %v4545_v1 = vld [vmem:[#allocation5 + $0x2a0] ss:$16 sps:$4 sm:$0xff]   ;;  %v4553_v3 = vld [vmem:[#allocation5 + $0x284] ss:$16 sps:$4 sm:$0xff]  }
  0x56   : > { %v4548_v4 = vld [vmem:[#allocation5 + $0x80] ss:$16 sps:$4 sm:$0xff]   ;;  %v4556_v6 = vld [vmem:[#allocation5 + $0x64] ss:$16 sps:$4 sm:$0xff]   ;;  %p5130_p0 = pnand %p5129_p11, %p5123_p4 }
  0x57   : > { %742 = vmatpush1.bf16.msra.mxu0 %v4502_v24  ;;  %693 = vmatpush1.bf16.msra.mxu1 %v4517_v31  ;;  %v4551_v5 = vld [vmem:[#allocation5 + $0x280] ss:$16 sps:$4 sm:$0xff]   ;;  %v4559_v7 = vld [vmem:[#allocation5 + $0x264] ss:$16 sps:$4 sm:$0xff]  }
  0x58   : > { %743 = vmatprep.subr.bf16.mxu0 %v4510_v26  ;;  %694 = vmatprep.subr.bf16.mxu1 %v4518_v32  ;;  %v4554_v8 = vld [vmem:[#allocation5 + $0x60] ss:$16 sps:$4 sm:$0xff]   ;;  %v4562_v10 = vld [vmem:[#allocation5 + $0x44] ss:$16 sps:$4 sm:$0xff]  }
  0x59   : > { %v4557_v9 = vld [vmem:[#allocation5 + $0x260] ss:$16 sps:$4 sm:$0xff]   ;;  %v4565_v11 = vld [vmem:[#allocation5 + $0x244] ss:$16 sps:$4 sm:$0xff]  }
  0x5a   : > { %v4560_v12 = vld [vmem:[#allocation5 + $0x40] ss:$16 sps:$4 sm:$0xff]   ;;  %v4568_v14 = vld [vmem:[#allocation5 + $0x24] ss:$16 sps:$4 sm:$0xff]  }
  0x5b   : > { %744 = vmatpush1.bf16.msra.mxu0 %v4508_v27  ;;  %695 = vmatpush1.bf16.msra.mxu1 %v4523_v35  ;;  %v4563_v13 = vld [vmem:[#allocation5 + $0x240] ss:$16 sps:$4 sm:$0xff]   ;;  %v4571_v15 = vld [vmem:[#allocation5 + $0x224] ss:$16 sps:$4 sm:$0xff]  }
  0x5c   : > { %745 = vmatprep.subr.bf16.mxu0 %v4516_v29  ;;  %696 = vmatprep.subr.bf16.mxu1 %v4524_v36  ;;  %v4566_v16 = vld [vmem:[#allocation5 + $0x20] ss:$16 sps:$4 sm:$0xff]   ;;  %v4574_v18 = vld [vmem:[#allocation5 + $0x4] ss:$16 sps:$4 sm:$0xff]  }
  0x5d   : > { %v4569_v17 = vld [vmem:[#allocation5 + $0x220] ss:$16 sps:$4 sm:$0xff]   ;;  %v4577_v19 = vld [vmem:[#allocation5 + $0x204] ss:$16 sps:$4 sm:$0xff]  }
  0x5e   : > { %v4572_v20 = vld [vmem:[#allocation5] ss:$16 sps:$4 sm:$0xff]   ;;  %v4580_v22 = vld [vmem:[#allocation5 + $0x1e4] ss:$16 sps:$4 sm:$0xff]  }
  0x5f   : > { %746 = vmatpush1.bf16.msra.mxu0 %v4514_v30  ;;  %697 = vmatpush1.bf16.msra.mxu1 %v4529_v39  ;;  %v4575_v21 = vld [vmem:[#allocation5 + $0x200] ss:$16 sps:$4 sm:$0xff]   ;;  %v4583_v23 = vld [vmem:[#allocation5 + $0x3e4] ss:$16 sps:$4 sm:$0xff]  }
  0x60   : > { %747 = vmatprep.subr.bf16.mxu0 %v4522_v33  ;;  %1594 = vmatprep.subr.bf16.mxu1 %v4532_v41  ;;  %v4578_v24 = vld [vmem:[#allocation5 + $0x1e0] ss:$16 sps:$4 sm:$0xff]   ;;  %v4586_v26 = vld [vmem:[#allocation5 + $0x1c4] ss:$16 sps:$4 sm:$0xff]  }
  0x61   : > { %v4581_v25 = vld [vmem:[#allocation5 + $0x3e0] ss:$16 sps:$4 sm:$0xff]   ;;  %v4589_v27 = vld [vmem:[#allocation5 + $0x3c4] ss:$16 sps:$4 sm:$0xff]  }
  0x62   : > { %v4584_v28 = vld [vmem:[#allocation5 + $0x1c0] ss:$16 sps:$4 sm:$0xff]   ;;  %v4592_v30 = vld [vmem:[#allocation5 + $0x1a4] ss:$16 sps:$4 sm:$0xff]  }
  0x63   : > { %748 = vmatpush1.bf16.msra.mxu0 %v4520_v34  ;;  %v4587_v29 = vld [vmem:[#allocation5 + $0x3c0] ss:$16 sps:$4 sm:$0xff]   ;;  %v4595_v31 = vld [vmem:[#allocation5 + $0x3a4] ss:$16 sps:$4 sm:$0xff]  }
  0x64   : > { %749 = vmatprep.subr.bf16.mxu0 %v4528_v37  ;;  %v4590_v32 = vld [vmem:[#allocation5 + $0x1a0] ss:$16 sps:$4 sm:$0xff]   ;;  %v4598_v34 = vld [vmem:[#allocation5 + $0x184] ss:$16 sps:$4 sm:$0xff]  }
  0x65   : > { %v4593_v33 = vld [vmem:[#allocation5 + $0x3a0] ss:$16 sps:$4 sm:$0xff]   ;;  %v4601_v35 = vld [vmem:[#allocation5 + $0x384] ss:$16 sps:$4 sm:$0xff]  }
  0x66   : > { %v4596_v36 = vld [vmem:[#allocation5 + $0x180] ss:$16 sps:$4 sm:$0xff]   ;;  %v4607_v39 = vld [vmem:[#allocation5 + $0x364] ss:$16 sps:$4 sm:$0xff]  }
  0x67   : > { %750 = vmatpush1.bf16.msra.mxu0 %v4526_v38  ;;  %v4599_v37 = vld [vmem:[#allocation5 + $0x380] ss:$16 sps:$4 sm:$0xff]   ;;  %v4604_v38 = vld [vmem:[#allocation5 + $0x164] ss:$16 sps:$4 sm:$0xff]  }
  0x68   : > { %1647 = vmatprep.subr.bf16.mxu0 %v4535_v42  ;;  %v4602_v41 = vld [vmem:[#allocation5 + $0x160] ss:$16 sps:$4 sm:$0xff]  }
  0x69   : > { %v4605_v42 = vld [vmem:[#allocation5 + $0x360] ss:$16 sps:$4 sm:$0xff]  }
 0x10a   : > { %v4399_v43 = vpop.f32.mrf.mxu0 }
 0x10b   : > { %v458_v57 = vadd.f32 %v4399_v43, %v3907_v46  ;;  %v4610_v43 = vld [vmem:[#allocation5 + $0x144] ss:$16 sps:$4 sm:$0xff]  }
 0x10c   : > { %v449_v44 = vpop.f32.mrf.mxu0 }
 0x10d   : > { %v450_v48 = vadd.f32 %v3907_v46, %v449_v44  ;;  %v4613_v44 = vld [vmem:[#allocation5 + $0x344] ss:$16 sps:$4 sm:$0xff]  }
 0x10e   : > { %v4400_v45 = vpop.f32.mrf.mxu0 }
 0x10f   : > { %v461_v51 = vadd.f32 %v4400_v45, %v3907_v46  ;;  %v4608_v45 = vld [vmem:[#allocation5 + $0x140] ss:$16 sps:$4 sm:$0xff]  }
 0x110   : > { %v452_v47 = vpop.f32.mrf.mxu0 }
 0x111   : > { %v453_v49 = vadd.f32 %v3907_v46, %v452_v47  ;;  %v465_v58 = vpack.c.bf16 %v461_v51, %v458_v57  ;;  %v4611_v46 = vld [vmem:[#allocation5 + $0x340] ss:$16 sps:$4 sm:$0xff]   ;;  %v4616_v47 = vld [vmem:[#allocation5 + $0x124] ss:$16 sps:$4 sm:$0xff]   ;;  %v502_v57 = vlaneseq }
 0x112   : > { %v4622_v51 = vld [vmem:[#allocation5 + $0x104] ss:$16 sps:$4 sm:$0xff]  }
 0x113   : > { %v464_v50 = vpack.c.bf16 %v453_v49, %v450_v48  ;;  %v467_v63 = vmax.bf16 %v5197_v40, %v465_v58  ;;  %v4619_v48 = vld [vmem:[#allocation5 + $0x324] ss:$16 sps:$4 sm:$0xff]   ;;  %v4614_v49 = vld [vmem:[#allocation5 + $0x120] ss:$16 sps:$4 sm:$0xff]   ;;  %v5369_v58 = vshrl.u32 %v502_v57, 7 }
 0x115   : > { %v466_v52 = vmax.bf16 %v5197_v40, %v464_v50  ;;  %v4617_v50 = vld [vmem:[#allocation5 + $0x320] ss:$16 sps:$4 sm:$0xff]  }
 0x117   : > { %715 = vmatmul.mubr.bf16.vlgmr.msra.gmra.mxu1 %v466_v52  ;;  %768 = vmatmul.mubr.bf16.vlgmr.msra.gmra.mxu0 %v466_v52  ;;  %v4625_v52 = vld [vmem:[#allocation5 + $0x304] ss:$16 sps:$4 sm:$0xff]  }
 0x118   : > { %724 = vmatprep.mubr.bf16.mxu1 %v5197_v40  ;;  %777 = vmatprep.mubr.bf16.mxu0 %v5197_v40 }
 0x119   : > { %1595 = vmatpush1.bf16.msra.mxu1 %v4530_v53  ;;  %1648 = vmatpush1.bf16.msra.mxu0 %v4533_v54  ;;  %v4620_v53 = vld [vmem:[#allocation5 + $0x100] ss:$16 sps:$4 sm:$0xff]  }
 0x11a   : > { %1596 = vmatprep.subr.bf16.mxu1 %v4538_v55  ;;  %1649 = vmatprep.subr.bf16.mxu0 %v4541_v56  ;;  %v4623_v54 = vld [vmem:[#allocation5 + $0x300] ss:$16 sps:$4 sm:$0xff]   ;;  %v4628_v55 = vld [vmem:[#allocation5 + $0xec] ss:$16 sps:$4 sm:$0xff]  }
 0x11b   : > { %v4631_v56 = vld [vmem:[#allocation5 + $0x2ec] ss:$16 sps:$4 sm:$0xff]  }
 0x11d   : > { %1597 = vmatpush1.bf16.msra.mxu1 %v4536_v59  ;;  %1650 = vmatpush1.bf16.msra.mxu0 %v4539_v60  ;;  %v5372_v59 = vsub.s32 0, %v5369_v58  ;;  %v5375_v60 = vsub.s32 2, %v5369_v58 }
 0x11e   : > { %1598 = vmatprep.subr.bf16.mxu1 %v4544_v61  ;;  %1651 = vmatprep.subr.bf16.mxu0 %v4547_v62  ;;  %v500_v61 = vld [vmem:[%s5586_s4] sm:$0xf]  ;;  %v5381_v62 = vsub.s32 1, %v5369_v58 }
 0x11f   : > { %725 = vmatmul.mubr.bf16.gmra.mxu1 %v467_v63  ;;  %778 = vmatmul.mubr.bf16.gmra.mxu0 %v467_v63  ;;  %v5384_v63 = vsub.s32 3, %v5369_v58 }
 0x121   : > { %1599 = vmatpush1.bf16.msra.mxu1 %v4542_v0  ;;  %1652 = vmatpush1.bf16.msra.mxu0 %v4545_v1 }
 0x122   : > { %1600 = vmatprep.subr.bf16.mxu1 %v4550_v2  ;;  %1653 = vmatprep.subr.bf16.mxu0 %v4553_v3  ;;  %v505_v2 = vrot.slane %v500_v61, %v5372_v59  ;;  %v513_v3 = vrot.slane %v500_v61, %v5375_v60 }
 0x125   : > { %1601 = vmatpush1.bf16.msra.mxu1 %v4548_v4  ;;  %1654 = vmatpush1.bf16.msra.mxu0 %v4551_v5 }
 0x126   : > { %1602 = vmatprep.subr.bf16.mxu1 %v4556_v6  ;;  %1655 = vmatprep.subr.bf16.mxu0 %v4559_v7  ;;  %v509_v6 = vrot.slane %v500_v61, %v5381_v62  ;;  %v517_v7 = vrot.slane %v500_v61, %v5384_v63 }
 0x129   : > { %1603 = vmatpush1.bf16.msra.mxu1 %v4554_v8  ;;  %1656 = vmatpush1.bf16.msra.mxu0 %v4557_v9 }
 0x12a   : > { %1604 = vmatprep.subr.bf16.mxu1 %v4562_v10  ;;  %1657 = vmatprep.subr.bf16.mxu0 %v4565_v11 }
 0x12d   : > { %1605 = vmatpush1.bf16.msra.mxu1 %v4560_v12  ;;  %1658 = vmatpush1.bf16.msra.mxu0 %v4563_v13 }
 0x12e   : > { %1606 = vmatprep.subr.bf16.mxu1 %v4568_v14  ;;  %1659 = vmatprep.subr.bf16.mxu0 %v4571_v15 }
 0x131   : > { %1607 = vmatpush1.bf16.msra.mxu1 %v4566_v16  ;;  %1660 = vmatpush1.bf16.msra.mxu0 %v4569_v17 }
 0x132   : > { %1608 = vmatprep.subr.bf16.mxu1 %v4574_v18  ;;  %1661 = vmatprep.subr.bf16.mxu0 %v4577_v19 }
 0x135   : > { %1609 = vmatpush1.bf16.msra.mxu1 %v4572_v20  ;;  %1662 = vmatpush1.bf16.msra.mxu0 %v4575_v21 }
 0x136   : > { %1610 = vmatprep.subr.bf16.mxu1 %v4580_v22  ;;  %1663 = vmatprep.subr.bf16.mxu0 %v4583_v23 }
 0x139   : > { %1611 = vmatpush2.bf16.msra.mxu1 %v4578_v24  ;;  %1664 = vmatpush2.bf16.msra.mxu0 %v4581_v25 }
 0x13a   : > { %1612 = vmatprep.subr.bf16.mxu1 %v4586_v26  ;;  %1665 = vmatprep.subr.bf16.mxu0 %v4589_v27 }
 0x13d   : > { %1613 = vmatpush2.bf16.msra.mxu1 %v4584_v28  ;;  %1666 = vmatpush2.bf16.msra.mxu0 %v4587_v29 }
 0x13e   : > { %1614 = vmatprep.subr.bf16.mxu1 %v4592_v30  ;;  %1667 = vmatprep.subr.bf16.mxu0 %v4595_v31  ;;  %v4626_v30 = vld [vmem:[#allocation5 + $0xe8] ss:$16 sps:$4 sm:$0xff]  }
 0x141   : > { %1615 = vmatpush2.bf16.msra.mxu1 %v4590_v32  ;;  %1668 = vmatpush2.bf16.msra.mxu0 %v4593_v33 }
 0x142   : > { %1616 = vmatprep.subr.bf16.mxu1 %v4598_v34  ;;  %1669 = vmatprep.subr.bf16.mxu0 %v4601_v35  ;;  %v4629_v35 = vld [vmem:[#allocation5 + $0x2e8] ss:$16 sps:$4 sm:$0xff]  }
 0x145   : > { %1617 = vmatpush2.bf16.msra.mxu1 %v4596_v36  ;;  %1670 = vmatpush2.bf16.msra.mxu0 %v4599_v37  ;;  %v4634_v36 = vld [vmem:[#allocation5 + $0xcc] ss:$16 sps:$4 sm:$0xff]  }
 0x146   : > { %1618 = vmatprep.subr.bf16.mxu1 %v4604_v38  ;;  %1671 = vmatprep.subr.bf16.mxu0 %v4607_v39  ;;  %v4637_v39 = vld [vmem:[#allocation5 + $0x2cc] ss:$16 sps:$4 sm:$0xff]  }
 0x149   : > { %1619 = vmatpush2.bf16.msra.mxu1 %v4602_v41  ;;  %1672 = vmatpush2.bf16.msra.mxu0 %v4605_v42 }
 0x14a   : > { %1620 = vmatprep.subr.bf16.mxu1 %v4610_v43  ;;  %1673 = vmatprep.subr.bf16.mxu0 %v4613_v44 }
 0x14d   : > { %1621 = vmatpush2.bf16.msra.mxu1 %v4608_v45  ;;  %1674 = vmatpush2.bf16.msra.mxu0 %v4611_v46 }
 0x14e   : > { %1622 = vmatprep.subr.bf16.mxu1 %v4616_v47  ;;  %1675 = vmatprep.subr.bf16.mxu0 %v4619_v48 }
 0x151   : > { %1623 = vmatpush2.bf16.msra.mxu1 %v4614_v49  ;;  %1676 = vmatpush2.bf16.msra.mxu0 %v4617_v50  ;;  %v4632_v49 = vld [vmem:[#allocation5 + $0xc8] ss:$16 sps:$4 sm:$0xff]  }
 0x152   : > { %1624 = vmatprep.subr.bf16.mxu1 %v4622_v51  ;;  %1677 = vmatprep.subr.bf16.mxu0 %v4625_v52  ;;  %v4635_v51 = vld [vmem:[#allocation5 + $0x2c8] ss:$16 sps:$4 sm:$0xff]   ;;  %v4640_v52 = vld [vmem:[#allocation5 + $0xac] ss:$16 sps:$4 sm:$0xff]  }
 0x155   : > { %1625 = vmatpush2.bf16.msra.mxu1 %v4620_v53  ;;  %1678 = vmatpush2.bf16.msra.mxu0 %v4623_v54 }
 0x156   : > { %1700 = vmatprep.subr.bf16.mxu1 %v4628_v55  ;;  %1753 = vmatprep.subr.bf16.mxu0 %v4631_v56  ;;  %v4643_v56 = vld [vmem:[#allocation5 + $0x2ac] ss:$16 sps:$4 sm:$0xff]  }
 0x1d7   : > { %v716_v0 = vpop.f32.mrf.mxu1  ;;  %v769_v1 = vpop.f32.mrf.mxu0 }
 0x1d8   : > { %v717_v12 = vadd.f32 %v716_v0, %v505_v2  ;;  %v770_v13 = vadd.f32 %v769_v1, %v513_v3  ;;  %v4638_v0 = vld [vmem:[#allocation5 + $0xa8] ss:$16 sps:$4 sm:$0xff]  }
 0x1d9   : > { %v718_v4 = vpop.f32.mrf.mxu1  ;;  %v771_v5 = vpop.f32.mrf.mxu0  ;;  %v4641_v1 = vld [vmem:[#allocation5 + $0x2a8] ss:$16 sps:$4 sm:$0xff]  }
 0x1da   : > { %v719_v16 = vadd.f32 %v718_v4, %v509_v6  ;;  %v772_v17 = vadd.f32 %v771_v5, %v517_v7  ;;  %v4646_v4 = vld [vmem:[#allocation5 + $0x8c] ss:$16 sps:$4 sm:$0xff]  }
 0x1db   : > { %v720_v8 = vpop.f32.mrf.mxu1  ;;  %v773_v9 = vpop.f32.mrf.mxu0  ;;  %v4649_v5 = vld [vmem:[#allocation5 + $0x28c] ss:$16 sps:$4 sm:$0xff]  }
 0x1dc   : > { %v721_v10 = vadd.f32 %v720_v8, %v505_v2  ;;  %v774_v11 = vadd.f32 %v773_v9, %v513_v3  ;;  %v4652_v8 = vld [vmem:[#allocation5 + $0x6c] ss:$16 sps:$4 sm:$0xff]  }
 0x1dd   : > { %v722_v14 = vpop.f32.mrf.mxu1  ;;  %v775_v15 = vpop.f32.mrf.mxu0  ;;  %v4655_v9 = vld [vmem:[#allocation5 + $0x26c] ss:$16 sps:$4 sm:$0xff]  }
 0x1de   : > { %v723_v18 = vadd.f32 %v722_v14, %v509_v6  ;;  %v776_v19 = vadd.f32 %v775_v15, %v517_v7  ;;  %v788_v20 = vpack.c.bf16 %v721_v10, %v717_v12  ;;  %v790_v21 = vpack.c.bf16 %v774_v11, %v770_v13  ;;  %v4650_v10 = vld [vmem:[#allocation5 + $0x68] ss:$16 sps:$4 sm:$0xff]   ;;  %v4658_v12 = vld [vmem:[#allocation5 + $0x4c] ss:$16 sps:$4 sm:$0xff]  }
 0x1df   : > { %v726_v22 = vpop.f32.mrf.mxu1  ;;  %v779_v23 = vpop.f32.mrf.mxu0  ;;  %v4653_v11 = vld [vmem:[#allocation5 + $0x268] ss:$16 sps:$4 sm:$0xff]   ;;  %v4661_v13 = vld [vmem:[#allocation5 + $0x24c] ss:$16 sps:$4 sm:$0xff]  }
 0x1e0   : > { %v789_v24 = vpack.c.bf16 %v723_v18, %v719_v16  ;;  %v791_v25 = vpack.c.bf16 %v776_v19, %v772_v17  ;;  %v5393_v31 = vmax.bf16 %v5197_v40, %v788_v20  ;;  %v5396_v32 = vmax.bf16 %v5197_v40, %v790_v21  ;;  %v4656_v14 = vld [vmem:[#allocation5 + $0x48] ss:$16 sps:$4 sm:$0xff]   ;;  %v4664_v16 = vld [vmem:[#allocation5 + $0x2c] ss:$16 sps:$4 sm:$0xff]  }
 0x1e1   : > { %v728_v26 = vpop.f32.mrf.mxu1  ;;  %v781_v27 = vpop.f32.mrf.mxu0  ;;  %v727_v41 = vadd.f32 %v726_v22, %v505_v2  ;;  %v780_v42 = vadd.f32 %v779_v23, %v513_v3  ;;  %v4659_v15 = vld [vmem:[#allocation5 + $0x248] ss:$16 sps:$4 sm:$0xff]   ;;  %v4667_v17 = vld [vmem:[#allocation5 + $0x22c] ss:$16 sps:$4 sm:$0xff]  }
 0x1e2   : > { %v797_v28 = vmax.bf16 %v5197_v40, %v789_v24  ;;  %v799_v29 = vmax.bf16 %v5197_v40, %v791_v25  ;;  %v729_v45 = vadd.f32 %v728_v26, %v509_v6  ;;  %v782_v46 = vadd.f32 %v781_v27, %v517_v7  ;;  %v4662_v18 = vld [vmem:[#allocation5 + $0x28] ss:$16 sps:$4 sm:$0xff]   ;;  %v4670_v20 = vld [vmem:[#allocation5 + $0xc] ss:$16 sps:$4 sm:$0xff]  }
 0x1e3   : > { %v730_v33 = vpop.f32.mrf.mxu1  ;;  %v783_v34 = vpop.f32.mrf.mxu0  ;;  %v4665_v19 = vld [vmem:[#allocation5 + $0x228] ss:$16 sps:$4 sm:$0xff]   ;;  %v4673_v21 = vld [vmem:[#allocation5 + $0x20c] ss:$16 sps:$4 sm:$0xff]  }
 0x1e4   : > { %v731_v37 = vadd.f32 %v730_v33, %v505_v2  ;;  %v784_v38 = vadd.f32 %v783_v34, %v513_v3  ;;  %1626 = vmatprep.mubr.bf16.mxu1 %v797_v28  ;;  %1679 = vmatprep.mubr.bf16.mxu0 %v799_v29  ;;  %v4668_v22 = vld [vmem:[#allocation5 + $0x8] ss:$16 sps:$4 sm:$0xff]   ;;  %v4676_v24 = vld [vmem:[#allocation5 + $0x1ec] ss:$16 sps:$4 sm:$0xff]  }
 0x1e5   : > { %v732_v43 = vpop.f32.mrf.mxu1  ;;  %v785_v44 = vpop.f32.mrf.mxu0  ;;  %1627 = vmatmul.mubr.bf16.vlgmr.msra.gmra.mxu1 %v5393_v31  ;;  %1680 = vmatmul.mubr.bf16.vlgmr.msra.gmra.mxu0 %v5396_v32  ;;  %v4671_v23 = vld [vmem:[#allocation5 + $0x208] ss:$16 sps:$4 sm:$0xff]   ;;  %v4679_v25 = vld [vmem:[#allocation5 + $0x3ec] ss:$16 sps:$4 sm:$0xff]  }
 0x1e6   : > { %v733_v47 = vadd.f32 %v732_v43, %v509_v6  ;;  %v786_v48 = vadd.f32 %v785_v44, %v517_v7  ;;  %1701 = vmatpush1.bf16.msra.mxu1 %v4626_v30  ;;  %v792_v50 = vpack.c.bf16 %v731_v37, %v727_v41  ;;  %1754 = vmatpush1.bf16.msra.mxu0 %v4629_v35  ;;  %v4644_v6 = vld [vmem:[#allocation5 + $0x88] ss:$16 sps:$4 sm:$0xff]   ;;  %v4688_v34 = vld [vmem:[#allocation5 + $0x1ac] ss:$16 sps:$4 sm:$0xff]  }
 0x1e7   : > { %1702 = vmatprep.subr.bf16.mxu1 %v4634_v36  ;;  %v794_v53 = vpack.c.bf16 %v784_v38, %v780_v42  ;;  %1755 = vmatprep.subr.bf16.mxu0 %v4637_v39  ;;  %v4647_v7 = vld [vmem:[#allocation5 + $0x288] ss:$16 sps:$4 sm:$0xff]   ;;  %v4691_v35 = vld [vmem:[#allocation5 + $0x3ac] ss:$16 sps:$4 sm:$0xff]  }
 0x1e8   : > { %v793_v54 = vpack.c.bf16 %v733_v47, %v729_v45  ;;  %v795_v55 = vpack.c.bf16 %v786_v48, %v782_v46  ;;  %v5407_v2 = vmax.bf16 %v5197_v40, %v792_v50  ;;  %v4674_v26 = vld [vmem:[#allocation5 + $0x1e8] ss:$16 sps:$4 sm:$0xff]   ;;  %v4694_v38 = vld [vmem:[#allocation5 + $0x18c] ss:$16 sps:$4 sm:$0xff]  }
 0x1e9   : > { %v5412_v3 = vmax.bf16 %v5197_v40, %v794_v53  ;;  %v4677_v27 = vld [vmem:[#allocation5 + $0x3e8] ss:$16 sps:$4 sm:$0xff]   ;;  %v4697_v39 = vld [vmem:[#allocation5 + $0x38c] ss:$16 sps:$4 sm:$0xff]  }
 0x1ea   : > { %1703 = vmatpush1.bf16.msra.mxu1 %v4632_v49  ;;  %v5401_v57 = vmax.bf16 %v5197_v40, %v793_v54  ;;  %v5404_v61 = vmax.bf16 %v5197_v40, %v795_v55  ;;  %1756 = vmatpush1.bf16.msra.mxu0 %v4635_v51  ;;  %v4680_v30 = vld [vmem:[#allocation5 + $0x1c8] ss:$16 sps:$4 sm:$0xff]   ;;  %v4700_v43 = vld [vmem:[#allocation5 + $0x16c] ss:$16 sps:$4 sm:$0xff]  }
 0x1eb   : > { %1704 = vmatprep.subr.bf16.mxu1 %v4640_v52  ;;  %1757 = vmatprep.subr.bf16.mxu0 %v4643_v56  ;;  %v4683_v33 = vld [vmem:[#allocation5 + $0x3c8] ss:$16 sps:$4 sm:$0xff]   ;;  %v4703_v44 = vld [vmem:[#allocation5 + $0x36c] ss:$16 sps:$4 sm:$0xff]  }
 0x1ec   : > { %1636 = vmatprep.mubr.bf16.mxu1 %v5401_v57  ;;  %1689 = vmatprep.mubr.bf16.mxu0 %v5404_v61  ;;  %v4686_v36 = vld [vmem:[#allocation5 + $0x1a8] ss:$16 sps:$4 sm:$0xff]   ;;  %v4706_v47 = vld [vmem:[#allocation5 + $0x14c] ss:$16 sps:$4 sm:$0xff]  }
 0x1ed   : > { %1637 = vmatmul.mubr.bf16.gmra.mxu1 %v5407_v2  ;;  %1690 = vmatmul.mubr.bf16.gmra.mxu0 %v5412_v3  ;;  %v4689_v37 = vld [vmem:[#allocation5 + $0x3a8] ss:$16 sps:$4 sm:$0xff]   ;;  %v4709_v48 = vld [vmem:[#allocation5 + $0x34c] ss:$16 sps:$4 sm:$0xff]  }
 0x1ee   : > { %1705 = vmatpush1.bf16.msra.mxu1 %v4638_v0  ;;  %1758 = vmatpush1.bf16.msra.mxu0 %v4641_v1  ;;  %v4692_v41 = vld [vmem:[#allocation5 + $0x188] ss:$16 sps:$4 sm:$0xff]   ;;  %v4712_v51 = vld [vmem:[#allocation5 + $0x12c] ss:$16 sps:$4 sm:$0xff]  }
 0x1ef   : > { %1732 = vmatprep.mubr.bf16.mxu1 %v797_v28  ;;  %1785 = vmatprep.mubr.bf16.mxu0 %v799_v29  ;;  %v4682_v28 = vld [vmem:[#allocation5 + $0x1cc] ss:$16 sps:$4 sm:$0xff]   ;;  %v4695_v42 = vld [vmem:[#allocation5 + $0x388] ss:$16 sps:$4 sm:$0xff]  }
 0x1f0   : > { %1706 = vmatprep.subr.bf16.mxu1 %v4646_v4  ;;  %1759 = vmatprep.subr.bf16.mxu0 %v4649_v5  ;;  %v4685_v29 = vld [vmem:[#allocation5 + $0x3cc] ss:$16 sps:$4 sm:$0xff]   ;;  %v4698_v45 = vld [vmem:[#allocation5 + $0x168] ss:$16 sps:$4 sm:$0xff]  }
 0x1f1   : > { %v4701_v46 = vld [vmem:[#allocation5 + $0x368] ss:$16 sps:$4 sm:$0xff]   ;;  %v4715_v52 = vld [vmem:[#allocation5 + $0x32c] ss:$16 sps:$4 sm:$0xff]  }
 0x1f2   : > { %1707 = vmatpush1.bf16.msra.mxu1 %v4644_v6  ;;  %1760 = vmatpush1.bf16.msra.mxu0 %v4647_v7  ;;  %v4704_v49 = vld [vmem:[#allocation5 + $0x148] ss:$16 sps:$4 sm:$0xff]   ;;  %v4718_v55 = vld [vmem:[#allocation5 + $0x10c] ss:$16 sps:$4 sm:$0xff]   ;;  %v4727_v6 = vld [vmem:[#allocation7 + $0x154] ss:$28 sps:$4 sm:$0xff]  }
 0x1f3   : > { %1708 = vmatprep.subr.bf16.mxu1 %v4652_v8  ;;  %1761 = vmatprep.subr.bf16.mxu0 %v4655_v9  ;;  %v4707_v50 = vld [vmem:[#allocation5 + $0x348] ss:$16 sps:$4 sm:$0xff]   ;;  %v4721_v56 = vld [vmem:[#allocation5 + $0x30c] ss:$16 sps:$4 sm:$0xff]  }
 0x1f4   : > { %v4710_v53 = vld [vmem:[#allocation5 + $0x128] ss:$16 sps:$4 sm:$0xff]   ;;  %v4725_v7 = vld [vmem:[#allocation7 + $0x150] ss:$28 sps:$4 sm:$0xff]  }
 0x1f5   : > { %v4713_v54 = vld [vmem:[#allocation5 + $0x328] ss:$16 sps:$4 sm:$0xff]  }
 0x1f6   : > { %1709 = vmatpush1.bf16.msra.mxu1 %v4650_v10  ;;  %1762 = vmatpush1.bf16.msra.mxu0 %v4653_v11  ;;  %v4716_v0 = vld [vmem:[#allocation5 + $0x108] ss:$16 sps:$4 sm:$0xff]   ;;  %v4733_v10 = vld [vmem:[#allocation7 + $0xe4] ss:$28 sps:$4 sm:$0xff]  }
 0x1f7   : > { %1710 = vmatprep.subr.bf16.mxu1 %v4658_v12  ;;  %1763 = vmatprep.subr.bf16.mxu0 %v4661_v13  ;;  %v4719_v1 = vld [vmem:[#allocation5 + $0x308] ss:$16 sps:$4 sm:$0xff]   ;;  %v4737_v13 = vld [vmem:[#allocation7 + $0x70] ss:$28 sps:$4 sm:$0xff]  }
 0x1f8   : > { %v4724_v4 = vld [vmem:[#allocation7 + $0x18c] ss:$28 sps:$4 sm:$0xff]   ;;  %v4730_v8 = vld [vmem:[#allocation7 + $0x11c] ss:$28 sps:$4 sm:$0xff]  }
 0x1f9   : > { %v4722_v5 = vld [vmem:[#allocation7 + $0x188] ss:$28 sps:$4 sm:$0xff]   ;;  %v4728_v9 = vld [vmem:[#allocation7 + $0x118] ss:$28 sps:$4 sm:$0xff]  }
 0x1fa   : > { %1711 = vmatpush1.bf16.msra.mxu1 %v4656_v14  ;;  %1764 = vmatpush1.bf16.msra.mxu0 %v4659_v15  ;;  %v4772_v11 = vld [vmem:[#allocation7 + $0x50c] ss:$28 sps:$4 sm:$0xff]   ;;  %v4778_v14 = vld [vmem:[#allocation7 + $0x4d4] ss:$28 sps:$4 sm:$0xff]   ;;  %v4742_v15 = vld [vmem:[#allocation7 + $0x3c] ss:$28 sps:$4 sm:$0xff]  }
 0x1fb   : > { %1712 = vmatprep.subr.bf16.mxu1 %v4664_v16  ;;  %1765 = vmatprep.subr.bf16.mxu0 %v4667_v17  ;;  %v4770_v12 = vld [vmem:[#allocation7 + $0x508] ss:$28 sps:$4 sm:$0xff]   ;;  %v4784_v16 = vld [vmem:[#allocation7 + $0x49c] ss:$28 sps:$4 sm:$0xff]  }
 0x1fc   : > { %v4740_v17 = vld [vmem:[#allocation7 + $0x38] ss:$28 sps:$4 sm:$0xff]  }
 0x1fe   : > { %1713 = vmatpush1.bf16.msra.mxu1 %v4662_v18  ;;  %1766 = vmatpush1.bf16.msra.mxu0 %v4665_v19  ;;  %v4745_v18 = vld [vmem:[#allocation7 + $0x4] ss:$28 sps:$4 sm:$0xff]  }
 0x1ff   : > { %1714 = vmatprep.subr.bf16.mxu1 %v4670_v20  ;;  %1767 = vmatprep.subr.bf16.mxu0 %v4673_v21  ;;  %v4788_v19 = vld [vmem:[#allocation7 + $0x460] ss:$28 sps:$4 sm:$0xff]  }
 0x200   : > { %v4790_v20 = vld [vmem:[#allocation7 + $0x464] ss:$28 sps:$4 sm:$0xff]  }
 0x201   : > { %v4743_v21 = vld [vmem:[#allocation7] ss:$28 sps:$4 sm:$0xff]  }
 0x202   : > { %1715 = vmatpush1.bf16.msra.mxu1 %v4668_v22  ;;  %1768 = vmatpush1.bf16.msra.mxu0 %v4671_v23  ;;  %v4748_v22 = vld [vmem:[#allocation7 + $0x34c] ss:$28 sps:$4 sm:$0xff]  }
 0x203   : > { %1716 = vmatprep.subr.bf16.mxu1 %v4676_v24  ;;  %1769 = vmatprep.subr.bf16.mxu0 %v4679_v25  ;;  %v4794_v23 = vld [vmem:[#allocation7 + $0x428] ss:$28 sps:$4 sm:$0xff]  }
 0x204   : > { %v4796_v24 = vld [vmem:[#allocation7 + $0x42c] ss:$28 sps:$4 sm:$0xff]  }
 0x205   : > { %v4746_v25 = vld [vmem:[#allocation7 + $0x348] ss:$28 sps:$4 sm:$0xff]  }
 0x206   : > { %1717 = vmatpush2.bf16.msra.mxu1 %v4674_v26  ;;  %1770 = vmatpush2.bf16.msra.mxu0 %v4677_v27  ;;  %v4751_v26 = vld [vmem:[#allocation7 + $0x314] ss:$28 sps:$4 sm:$0xff]  }
 0x207   : > { %1718 = vmatprep.subr.bf16.mxu1 %v4682_v28  ;;  %1771 = vmatprep.subr.bf16.mxu0 %v4685_v29  ;;  %v4800_v27 = vld [vmem:[#allocation7 + $0x3f0] ss:$28 sps:$4 sm:$0xff]  }
 0x208   : > { %v4802_v28 = vld [vmem:[#allocation7 + $0x3f4] ss:$28 sps:$4 sm:$0xff]  }
 0x209   : > { %v4749_v29 = vld [vmem:[#allocation7 + $0x310] ss:$28 sps:$4 sm:$0xff]  }
 0x20a   : > { %1719 = vmatpush2.bf16.msra.mxu1 %v4680_v30  ;;  %1772 = vmatpush2.bf16.msra.mxu0 %v4683_v33  ;;  %v4754_v30 = vld [vmem:[#allocation7 + $0x2dc] ss:$28 sps:$4 sm:$0xff]  }
 0x20b   : > { %1720 = vmatprep.subr.bf16.mxu1 %v4688_v34  ;;  %1773 = vmatprep.subr.bf16.mxu0 %v4691_v35  ;;  %v4806_v33 = vld [vmem:[#allocation7 + $0x3b8] ss:$28 sps:$4 sm:$0xff]  }
 0x20c   : > { %v4808_v34 = vld [vmem:[#allocation7 + $0x3bc] ss:$28 sps:$4 sm:$0xff]  }
 0x20d   : > { %v4752_v35 = vld [vmem:[#allocation7 + $0x2d8] ss:$28 sps:$4 sm:$0xff]  }
 0x20e   : > { %1721 = vmatpush2.bf16.msra.mxu1 %v4686_v36  ;;  %1774 = vmatpush2.bf16.msra.mxu0 %v4689_v37  ;;  %v4757_v36 = vld [vmem:[#allocation7 + $0x2a4] ss:$28 sps:$4 sm:$0xff]  }
 0x20f   : > { %1722 = vmatprep.subr.bf16.mxu1 %v4694_v38  ;;  %1775 = vmatprep.subr.bf16.mxu0 %v4697_v39  ;;  %v4812_v37 = vld [vmem:[#allocation7 + $0x380] ss:$28 sps:$4 sm:$0xff]  }
 0x210   : > { %v4814_v38 = vld [vmem:[#allocation7 + $0x384] ss:$28 sps:$4 sm:$0xff]  }
 0x211   : > { %v4755_v39 = vld [vmem:[#allocation7 + $0x2a0] ss:$28 sps:$4 sm:$0xff]  }
 0x212   : > { %1723 = vmatpush2.bf16.msra.mxu1 %v4692_v41  ;;  %1776 = vmatpush2.bf16.msra.mxu0 %v4695_v42  ;;  %v4760_v41 = vld [vmem:[#allocation7 + $0x26c] ss:$28 sps:$4 sm:$0xff]  }
 0x213   : > { %1724 = vmatprep.subr.bf16.mxu1 %v4700_v43  ;;  %1777 = vmatprep.subr.bf16.mxu0 %v4703_v44  ;;  %v4818_v42 = vld [vmem:[#allocation7 + $0x6c8] ss:$28 sps:$4 sm:$0xff]  }
 0x214   : > { %v4820_v43 = vld [vmem:[#allocation7 + $0x6cc] ss:$28 sps:$4 sm:$0xff]  }
 0x215   : > { %v4758_v44 = vld [vmem:[#allocation7 + $0x268] ss:$28 sps:$4 sm:$0xff]  }
 0x216   : > { %1725 = vmatpush2.bf16.msra.mxu1 %v4698_v45  ;;  %1778 = vmatpush2.bf16.msra.mxu0 %v4701_v46  ;;  %v4763_v45 = vld [vmem:[#allocation7 + $0x234] ss:$28 sps:$4 sm:$0xff]  }
 0x217   : > { %1726 = vmatprep.subr.bf16.mxu1 %v4706_v47  ;;  %1779 = vmatprep.subr.bf16.mxu0 %v4709_v48  ;;  %v4824_v46 = vld [vmem:[#allocation7 + $0x690] ss:$28 sps:$4 sm:$0xff]  }
 0x218   : > { %v4826_v47 = vld [vmem:[#allocation7 + $0x694] ss:$28 sps:$4 sm:$0xff]  }
 0x219   : > { %v4761_v48 = vld [vmem:[#allocation7 + $0x230] ss:$28 sps:$4 sm:$0xff]  }
 0x21a   : > { %1727 = vmatpush2.bf16.msra.mxu1 %v4704_v49  ;;  %1780 = vmatpush2.bf16.msra.mxu0 %v4707_v50  ;;  %v4766_v49 = vld [vmem:[#allocation7 + $0x1fc] ss:$28 sps:$4 sm:$0xff]  }
 0x21b   : > { %1728 = vmatprep.subr.bf16.mxu1 %v4712_v51  ;;  %1781 = vmatprep.subr.bf16.mxu0 %v4715_v52  ;;  %v4830_v50 = vld [vmem:[#allocation7 + $0x658] ss:$28 sps:$4 sm:$0xff]  }
 0x21c   : > { %v4832_v51 = vld [vmem:[#allocation7 + $0x65c] ss:$28 sps:$4 sm:$0xff]  }
 0x21d   : > { %v4764_v52 = vld [vmem:[#allocation7 + $0x1f8] ss:$28 sps:$4 sm:$0xff]  }
 0x21e   : > { %1729 = vmatpush2.bf16.msra.mxu1 %v4710_v53  ;;  %1782 = vmatpush2.bf16.msra.mxu0 %v4713_v54  ;;  %v4769_v53 = vld [vmem:[#allocation7 + $0x1c4] ss:$28 sps:$4 sm:$0xff]  }
 0x21f   : > { %1730 = vmatprep.subr.bf16.mxu1 %v4718_v55  ;;  %1783 = vmatprep.subr.bf16.mxu0 %v4721_v56  ;;  %v4836_v54 = vld [vmem:[#allocation7 + $0x620] ss:$28 sps:$4 sm:$0xff]  }
 0x220   : > { %v4838_v55 = vld [vmem:[#allocation7 + $0x624] ss:$28 sps:$4 sm:$0xff]  }
 0x221   : > { %v4767_v56 = vld [vmem:[#allocation7 + $0x1c0] ss:$28 sps:$4 sm:$0xff]  }
 0x222   : > { %1731 = vmatpush2.bf16.msra.mxu1 %v4716_v0  ;;  %1784 = vmatpush2.bf16.msra.mxu0 %v4719_v1  ;;  %v4775_v0 = vld [vmem:[#allocation7 + $0x194] ss:$28 sps:$4 sm:$0xff]   ;;  %v4842_v1 = vld [vmem:[#allocation7 + $0x5e8] ss:$28 sps:$4 sm:$0xff]  }
 0x223   : > { %3267 = vmatprep.subr.bf16.mxu1 %v4724_v4  ;;  %3320 = vmatprep.subr.bf16.mxu0 %v4772_v11  ;;  %v4844_v4 = vld [vmem:[#allocation7 + $0x5ec] ss:$28 sps:$4 sm:$0xff]  }
 0x225   : > { %1733 = vmatmul.mubr.bf16.vlgmr.msra.gmra.mxu1 %v5393_v31  ;;  %1786 = vmatmul.mubr.bf16.vlgmr.msra.gmra.mxu0 %v5396_v32  ;;  %v4731_v31 = vld [vmem:[#allocation7 + $0xe0] ss:$28 sps:$4 sm:$0xff]   ;;  %v4736_v32 = vld [vmem:[#allocation7 + $0xac] ss:$28 sps:$4 sm:$0xff]  }
 0x226   : > { %1742 = vmatprep.mubr.bf16.mxu1 %v5401_v57  ;;  %1795 = vmatprep.mubr.bf16.mxu0 %v5404_v61  ;;  %v4734_v57 = vld [vmem:[#allocation7 + $0xa8] ss:$28 sps:$4 sm:$0xff]   ;;  %v4739_v61 = vld [vmem:[#allocation7 + $0x74] ss:$28 sps:$4 sm:$0xff]  }
 0x227   : > { %3268 = vmatpush1.bf16.msra.mxu1 %v4722_v5  ;;  %3321 = vmatpush1.bf16.msra.mxu0 %v4770_v12  ;;  %v4850_v5 = vld [vmem:[#allocation7 + $0x5b4] ss:$28 sps:$4 sm:$0xff]  }
 0x228   : > { %3269 = vmatprep.subr.bf16.mxu1 %v4727_v6  ;;  %3322 = vmatprep.subr.bf16.mxu0 %v4778_v14  ;;  %v4848_v6 = vld [vmem:[#allocation7 + $0x5b0] ss:$28 sps:$4 sm:$0xff]  }
 0x22b   : > { %3270 = vmatpush1.bf16.msra.mxu1 %v4725_v7  ;;  %v4856_v7 = vld [vmem:[#allocation7 + $0x57c] ss:$28 sps:$4 sm:$0xff]  }
 0x22c   : > { %3271 = vmatprep.subr.bf16.mxu1 %v4730_v8  ;;  %v4854_v8 = vld [vmem:[#allocation7 + $0x578] ss:$28 sps:$4 sm:$0xff]  }
 0x22d   : > { %1743 = vmatmul.mubr.bf16.gmra.mxu1 %v5407_v2  ;;  %1796 = vmatmul.mubr.bf16.gmra.mxu0 %v5412_v3  ;;  %v4776_v2 = vld [vmem:[#allocation7 + $0x4d0] ss:$28 sps:$4 sm:$0xff]   ;;  %v4782_v3 = vld [vmem:[#allocation7 + $0x498] ss:$28 sps:$4 sm:$0xff]  }
 0x22e   : > { %3323 = vmatpush1.bf16.msra.mxu0 %v4776_v2 }
 0x22f   : > { %3272 = vmatpush1.bf16.msra.mxu1 %v4728_v9  ;;  %3324 = vmatprep.subr.bf16.mxu0 %v4784_v16  ;;  %v4862_v9 = vld [vmem:[#allocation7 + $0x544] ss:$28 sps:$4 sm:$0xff]  }
 0x230   : > { %3273 = vmatprep.subr.bf16.mxu1 %v4733_v10  ;;  %v4860_v10 = vld [vmem:[#allocation7 + $0x540] ss:$28 sps:$4 sm:$0xff]  }
 0x232   : > { %3325 = vmatpush1.bf16.msra.mxu0 %v4782_v3 }
 0x233   : > { %3274 = vmatpush1.bf16.msra.mxu1 %v4731_v31  ;;  %3326 = vmatprep.subr.bf16.mxu0 %v4790_v20  ;;  %v4868_v31 = vld [vmem:[#allocation7 + $0x514] ss:$28 sps:$4 sm:$0xff]  }
 0x234   : > { %3275 = vmatprep.subr.bf16.mxu1 %v4736_v32  ;;  %v5425_v32 = vld [vmem:[%s5588_s6] sm:$0xf] }
 0x235   : > { %v941_v12 = vrot.slane %v5425_v32, %v5381_v62 }
 0x236   : > { %3327 = vmatpush1.bf16.msra.mxu0 %v4788_v19 }
 0x237   : > { %3276 = vmatpush1.bf16.msra.mxu1 %v4734_v57  ;;  %3328 = vmatprep.subr.bf16.mxu0 %v4796_v24  ;;  %v937_v57 = vrot.slane %v5425_v32, %v5372_v59 }
 0x238   : > { %3277 = vmatprep.subr.bf16.mxu1 %v4739_v61 }
 0x23a   : > { %3329 = vmatpush1.bf16.msra.mxu0 %v4794_v23 }
 0x23b   : > { %3278 = vmatpush1.bf16.msra.mxu1 %v4737_v13  ;;  %3330 = vmatprep.subr.bf16.mxu0 %v4802_v28 }
 0x23c   : > { %3279 = vmatprep.subr.bf16.mxu1 %v4742_v15 }
 0x23e   : > { %3331 = vmatpush1.bf16.msra.mxu0 %v4800_v27 }
 0x23f   : > { %3280 = vmatpush1.bf16.msra.mxu1 %v4740_v17  ;;  %3332 = vmatprep.subr.bf16.mxu0 %v4808_v34 }
 0x240   : > { %3281 = vmatprep.subr.bf16.mxu1 %v4745_v18 }
 0x242   : > { %3333 = vmatpush1.bf16.msra.mxu0 %v4806_v33 }
 0x243   : > { %3282 = vmatpush1.bf16.msra.mxu1 %v4743_v21  ;;  %3334 = vmatprep.subr.bf16.mxu0 %v4814_v38 }
 0x244   : > { %3283 = vmatprep.subr.bf16.mxu1 %v4748_v22 }
 0x246   : > { %3335 = vmatpush1.bf16.msra.mxu0 %v4812_v37 }
 0x247   : > { %3284 = vmatpush2.bf16.msra.mxu1 %v4746_v25  ;;  %3336 = vmatprep.subr.bf16.mxu0 %v4820_v43  ;;  %v4781_v43 = vld [vmem:[#allocation7 + $0x15c] ss:$28 sps:$4 sm:$0xff]  }
 0x248   : > { %3285 = vmatprep.subr.bf16.mxu1 %v4751_v26 }
 0x24a   : > { %3337 = vmatpush2.bf16.msra.mxu0 %v4818_v42 }
 0x24b   : > { %3286 = vmatpush2.bf16.msra.mxu1 %v4749_v29  ;;  %3338 = vmatprep.subr.bf16.mxu0 %v4826_v47 }
 0x24c   : > { %3287 = vmatprep.subr.bf16.mxu1 %v4754_v30 }
 0x24e   : > { %3339 = vmatpush2.bf16.msra.mxu0 %v4824_v46 }
 0x24f   : > { %3288 = vmatpush2.bf16.msra.mxu1 %v4752_v35  ;;  %3340 = vmatprep.subr.bf16.mxu0 %v4832_v51 }
 0x250   : > { %3289 = vmatprep.subr.bf16.mxu1 %v4757_v36 }
 0x252   : > { %3341 = vmatpush2.bf16.msra.mxu0 %v4830_v50  ;;  %v4779_v50 = vld [vmem:[#allocation7 + $0x158] ss:$28 sps:$4 sm:$0xff]  }
 0x253   : > { %3290 = vmatpush2.bf16.msra.mxu1 %v4755_v39  ;;  %3342 = vmatprep.subr.bf16.mxu0 %v4838_v55  ;;  %v4773_v39 = vld [vmem:[#allocation7 + $0x190] ss:$28 sps:$4 sm:$0xff]   ;;  %v4785_v55 = vld [vmem:[#allocation7 + $0x120] ss:$28 sps:$4 sm:$0xff]  }
 0x254   : > { %3291 = vmatprep.subr.bf16.mxu1 %v4760_v41 }
 0x256   : > { %3343 = vmatpush2.bf16.msra.mxu0 %v4836_v54 }
 0x257   : > { %3292 = vmatpush2.bf16.msra.mxu1 %v4758_v44  ;;  %3344 = vmatprep.subr.bf16.mxu0 %v4844_v4  ;;  %v4799_v4 = vld [vmem:[#allocation7 + $0xb4] ss:$28 sps:$4 sm:$0xff]  }
 0x258   : > { %3293 = vmatprep.subr.bf16.mxu1 %v4763_v45 }
 0x25a   : > { %3345 = vmatpush2.bf16.msra.mxu0 %v4842_v1  ;;  %v4791_v1 = vld [vmem:[#allocation7 + $0xe8] ss:$28 sps:$4 sm:$0xff]  }
 0x25b   : > { %3294 = vmatpush2.bf16.msra.mxu1 %v4761_v48  ;;  %3346 = vmatprep.subr.bf16.mxu0 %v4850_v5  ;;  %v4797_v5 = vld [vmem:[#allocation7 + $0xb0] ss:$28 sps:$4 sm:$0xff]  }
 0x25c   : > { %3295 = vmatprep.subr.bf16.mxu1 %v4766_v49 }
 0x25e   : > { %3347 = vmatpush2.bf16.msra.mxu0 %v4848_v6  ;;  %v4805_v6 = vld [vmem:[#allocation7 + $0x7c] ss:$28 sps:$4 sm:$0xff]  }
 0x25f   : > { %3296 = vmatpush2.bf16.msra.mxu1 %v4764_v52  ;;  %3348 = vmatprep.subr.bf16.mxu0 %v4856_v7  ;;  %v4787_v52 = vld [vmem:[#allocation7 + $0x124] ss:$28 sps:$4 sm:$0xff]   ;;  %v4803_v7 = vld [vmem:[#allocation7 + $0x78] ss:$28 sps:$4 sm:$0xff]  }
 0x260   : > { %3297 = vmatprep.subr.bf16.mxu1 %v4769_v53 }
 0x262   : > { %3349 = vmatpush2.bf16.msra.mxu0 %v4854_v8  ;;  %v4811_v8 = vld [vmem:[#allocation7 + $0x44] ss:$28 sps:$4 sm:$0xff]  }
 0x263   : > { %3298 = vmatpush2.bf16.msra.mxu1 %v4767_v56  ;;  %3350 = vmatprep.subr.bf16.mxu0 %v4862_v9  ;;  %v4809_v9 = vld [vmem:[#allocation7 + $0x40] ss:$28 sps:$4 sm:$0xff]  }
 0x264   : > { %3373 = vmatprep.subr.bf16.mxu1 %v4775_v0  ;;  %v4793_v0 = vld [vmem:[#allocation7 + $0xec] ss:$28 sps:$4 sm:$0xff]  }
 0x266   : > { %3351 = vmatpush2.bf16.msra.mxu0 %v4860_v10  ;;  %v4817_v10 = vld [vmem:[#allocation7 + $0xc] ss:$28 sps:$4 sm:$0xff]  }
 0x267   : > { %3426 = vmatprep.subr.bf16.mxu0 %v4868_v31  ;;  %v4815_v31 = vld [vmem:[#allocation7 + $0x8] ss:$28 sps:$4 sm:$0xff]  }
 0x2a5   : > { %v1628_v11 = vpop.f32.mrf.mxu1  ;;  %v1681_v61 = vpop.f32.mrf.mxu0 }
 0x2a6   : > { %v1629_v15 = vadd.f32 %v1628_v11, %v937_v57  ;;  %v4821_v11 = vld [vmem:[#allocation7 + $0x350] ss:$28 sps:$4 sm:$0xff]  }
 0x2a7   : > { %v1630_v13 = vpop.f32.mrf.mxu1  ;;  %v1683_v14 = vpop.f32.mrf.mxu0 }
 0x2a8   : > { %v1631_v16 = vadd.f32 %v1630_v13, %v941_v12  ;;  %v1682_v22 = vadd.f32 %v1681_v61, %v1629_v15  ;;  %v4829_v61 = vld [vmem:[#allocation7 + $0x31c] ss:$28 sps:$4 sm:$0xff]   ;;  %v4835_v13 = vld [vmem:[#allocation7 + $0x2e4] ss:$28 sps:$4 sm:$0xff]   ;;  %v4841_v15 = vld [vmem:[#allocation7 + $0x2ac] ss:$28 sps:$4 sm:$0xff]  }
 0x2a9   : > { %v1632_v2 = vpop.f32.mrf.mxu1  ;;  %v1685_v3 = vpop.f32.mrf.mxu0 }
 0x2aa   : > { %v1633_v17 = vadd.f32 %v1632_v2, %v937_v57  ;;  %v1684_v24 = vadd.f32 %v1683_v14, %v1631_v16  ;;  %v4833_v14 = vld [vmem:[#allocation7 + $0x2e0] ss:$28 sps:$4 sm:$0xff]   ;;  %v4839_v2 = vld [vmem:[#allocation7 + $0x2a8] ss:$28 sps:$4 sm:$0xff]   ;;  %v4845_v16 = vld [vmem:[#allocation7 + $0x270] ss:$28 sps:$4 sm:$0xff]  }
 0x2ab   : > { %v1634_v18 = vpop.f32.mrf.mxu1  ;;  %v1687_v19 = vpop.f32.mrf.mxu0 }
 0x2ac   : > { %v1686_v20 = vadd.f32 %v1685_v3, %v1633_v17  ;;  %v1635_v21 = vadd.f32 %v1634_v18, %v941_v12  ;;  %v4847_v3 = vld [vmem:[#allocation7 + $0x274] ss:$28 sps:$4 sm:$0xff]   ;;  %v4853_v17 = vld [vmem:[#allocation7 + $0x23c] ss:$28 sps:$4 sm:$0xff]   ;;  %v945_v18 = vrot.slane %v5425_v32, %v5375_v60 }
 0x2ad   : > { %v1638_v23 = vpop.f32.mrf.mxu1  ;;  %v1691_v26 = vpop.f32.mrf.mxu0 }
 0x2ae   : > { %v1688_v25 = vadd.f32 %v1687_v19, %v1635_v21  ;;  %v1806_v27 = vpack.c.bf16 %v1686_v20, %v1682_v22  ;;  %v1639_v33 = vadd.f32 %v1638_v23, %v937_v57  ;;  %v949_v21 = vrot.slane %v5425_v32, %v5384_v63  ;;  %v4851_v22 = vld [vmem:[#allocation7 + $0x238] ss:$28 sps:$4 sm:$0xff]  }
 0x2af   : > { %v1640_v28 = vpop.f32.mrf.mxu1  ;;  %v1693_v30 = vpop.f32.mrf.mxu0 }
 0x2b0   : > { %v1807_v29 = vpack.c.bf16 %v1688_v25, %v1684_v24  ;;  %v1641_v36 = vadd.f32 %v1640_v28, %v941_v12  ;;  %v5435_v41 = vmax.bf16 %v5197_v40, %v1806_v27  ;;  %v1692_v46 = vadd.f32 %v1691_v26, %v1639_v33  ;;  %v4859_v24 = vld [vmem:[#allocation7 + $0x204] ss:$28 sps:$4 sm:$0xff]  }
 0x2b1   : > { %v1642_v34 = vpop.f32.mrf.mxu1  ;;  %v1695_v38 = vpop.f32.mrf.mxu0  ;;  %v4857_v33 = vld [vmem:[#allocation7 + $0x200] ss:$28 sps:$4 sm:$0xff]  }
 0x2b2   : > { %v5432_v35 = vmax.bf16 %v5197_v40, %v1807_v29  ;;  %v1643_v37 = vadd.f32 %v1642_v34, %v937_v57  ;;  %v1694_v48 = vadd.f32 %v1693_v30, %v1641_v36  ;;  %v4823_v57 = vld [vmem:[#allocation7 + $0x354] ss:$28 sps:$4 sm:$0xff]   ;;  %v4865_v36 = vld [vmem:[#allocation7 + $0x1cc] ss:$28 sps:$4 sm:$0xff]  }
 0x2b3   : > { %v1644_v42 = vpop.f32.mrf.mxu1  ;;  %v1697_v47 = vpop.f32.mrf.mxu0 }
 0x2b4   : > { %v1696_v44 = vadd.f32 %v1695_v38, %v1643_v37  ;;  %v1645_v45 = vadd.f32 %v1644_v42, %v941_v12  ;;  %3299 = vmatprep.mubr.bf16.mxu1 %v5432_v35  ;;  %v4827_v12 = vld [vmem:[#allocation7 + $0x318] ss:$28 sps:$4 sm:$0xff]  }
 0x2b5   : > { %3300 = vmatmul.mubr.bf16.vlgmr.msra.gmra.mxu1 %v5435_v41 }
 0x2b6   : > { %v1698_v49 = vadd.f32 %v1697_v47, %v1645_v45  ;;  %3374 = vmatpush1.bf16.msra.mxu1 %v4773_v39  ;;  %v1810_v51 = vpack.c.bf16 %v1696_v44, %v1692_v46  ;;  %v4863_v46 = vld [vmem:[#allocation7 + $0x1c8] ss:$28 sps:$4 sm:$0xff]  }
 0x2b7   : > { %3375 = vmatprep.subr.bf16.mxu1 %v4781_v43 }
 0x2b8   : > { %v1811_v53 = vpack.c.bf16 %v1698_v49, %v1694_v48  ;;  %v5443_v56 = vmax.bf16 %v5197_v40, %v1810_v51  ;;  %v4871_v49 = vld [vmem:[#allocation7 + $0x19c] ss:$28 sps:$4 sm:$0xff]  }
 0x2ba   : > { %v5440_v54 = vmax.bf16 %v5197_v40, %v1811_v53  ;;  %3376 = vmatpush1.bf16.msra.mxu1 %v4779_v50 }
 0x2bb   : > { %3377 = vmatprep.subr.bf16.mxu1 %v4787_v52 }
 0x2bc   : > { %3309 = vmatprep.mubr.bf16.mxu1 %v5440_v54 }
 0x2bd   : > { %3310 = vmatmul.mubr.bf16.gmra.mxu1 %v5443_v56 }
 0x2be   : > { %3378 = vmatpush1.bf16.msra.mxu1 %v4785_v55  ;;  %3405 = vmatprep.mubr.bf16.mxu1 %v5432_v35 }
 0x2bf   : > { %3379 = vmatprep.subr.bf16.mxu1 %v4793_v0 }
 0x2c2   : > { %3380 = vmatpush1.bf16.msra.mxu1 %v4791_v1 }
 0x2c3   : > { %3381 = vmatprep.subr.bf16.mxu1 %v4799_v4 }
 0x2c6   : > { %3382 = vmatpush1.bf16.msra.mxu1 %v4797_v5  ;;  %v4866_v5 = vld [vmem:[#allocation7 + $0x510] ss:$28 sps:$4 sm:$0xff]  }
 0x2c7   : > { %3383 = vmatprep.subr.bf16.mxu1 %v4805_v6 }
 0x2ca   : > { %3384 = vmatpush1.bf16.msra.mxu1 %v4803_v7 }
 0x2cb   : > { %3385 = vmatprep.subr.bf16.mxu1 %v4811_v8  ;;  %v4869_v8 = vld [vmem:[#allocation7 + $0x198] ss:$28 sps:$4 sm:$0xff]  }
 0x2ce   : > { %3386 = vmatpush1.bf16.msra.mxu1 %v4809_v9  ;;  %v4874_v9 = vld [vmem:[#allocation7 + $0x4dc] ss:$28 sps:$4 sm:$0xff]  }
 0x2cf   : > { %3387 = vmatprep.subr.bf16.mxu1 %v4817_v10 }
 0x2d2   : > { %3388 = vmatpush1.bf16.msra.mxu1 %v4815_v31 }
 0x2d3   : > { %3389 = vmatprep.subr.bf16.mxu1 %v4823_v57  ;;  %v4877_v57 = vld [vmem:[#allocation7 + $0x164] ss:$28 sps:$4 sm:$0xff]  }
 0x2d6   : > { %3390 = vmatpush2.bf16.msra.mxu1 %v4821_v11 }
 0x2d7   : > { %3391 = vmatprep.subr.bf16.mxu1 %v4829_v61 }
 0x2da   : > { %3392 = vmatpush2.bf16.msra.mxu1 %v4827_v12 }
 0x2db   : > { %3393 = vmatprep.subr.bf16.mxu1 %v4835_v13 }
 0x2de   : > { %3394 = vmatpush2.bf16.msra.mxu1 %v4833_v14  ;;  %v4872_v14 = vld [vmem:[#allocation7 + $0x4d8] ss:$28 sps:$4 sm:$0xff]  }
 0x2df   : > { %3395 = vmatprep.subr.bf16.mxu1 %v4841_v15 }
 0x2e2   : > { %3396 = vmatpush2.bf16.msra.mxu1 %v4839_v2  ;;  %v4875_v2 = vld [vmem:[#allocation7 + $0x160] ss:$28 sps:$4 sm:$0xff]  }
 0x2e3   : > { %3397 = vmatprep.subr.bf16.mxu1 %v4847_v3  ;;  %v4880_v3 = vld [vmem:[#allocation7 + $0x4a4] ss:$28 sps:$4 sm:$0xff]  }
 0x2e5   : > { %v1734_v19 = vpop.f32.mrf.mxu1  ;;  %v1787_v20 = vpop.f32.mrf.mxu0 }
 0x2e6   : > { %3398 = vmatpush2.bf16.msra.mxu1 %v4845_v16  ;;  %v1735_v26 = vadd.f32 %v1734_v19, %v945_v18  ;;  %v4878_v19 = vld [vmem:[#allocation7 + $0x4a0] ss:$28 sps:$4 sm:$0xff]  }
 0x2e7   : > { %v1736_v23 = vpop.f32.mrf.mxu1  ;;  %3399 = vmatprep.subr.bf16.mxu1 %v4853_v17  ;;  %v1789_v25 = vpop.f32.mrf.mxu0  ;;  %v4883_v17 = vld [vmem:[#allocation7 + $0x12c] ss:$28 sps:$4 sm:$0xff]  }
 0x2e8   : > { %v1737_v28 = vadd.f32 %v1736_v23, %v949_v21  ;;  %v1788_v42 = vadd.f32 %v1787_v20, %v1735_v26  ;;  %v4889_v23 = vld [vmem:[#allocation7 + $0xf4] ss:$28 sps:$4 sm:$0xff]   ;;  %v4895_v26 = vld [vmem:[#allocation7 + $0xbc] ss:$28 sps:$4 sm:$0xff]  }
 0x2e9   : > { %v1738_v27 = vpop.f32.mrf.mxu1  ;;  %v1791_v30 = vpop.f32.mrf.mxu0 }
 0x2ea   : > { %v1739_v29 = vadd.f32 %v1738_v27, %v945_v18  ;;  %3400 = vmatpush2.bf16.msra.mxu1 %v4851_v22  ;;  %v1790_v43 = vadd.f32 %v1789_v25, %v1737_v28  ;;  %v4886_v22 = vld [vmem:[#allocation7 + $0x46c] ss:$28 sps:$4 sm:$0xff]   ;;  %v4892_v25 = vld [vmem:[#allocation7 + $0x434] ss:$28 sps:$4 sm:$0xff]  }
 0x2eb   : > { %v1740_v34 = vpop.f32.mrf.mxu1  ;;  %3401 = vmatprep.subr.bf16.mxu1 %v4859_v24  ;;  %v1793_v39 = vpop.f32.mrf.mxu0  ;;  %v4884_v24 = vld [vmem:[#allocation7 + $0x468] ss:$28 sps:$4 sm:$0xff]   ;;  %v4890_v27 = vld [vmem:[#allocation7 + $0x430] ss:$28 sps:$4 sm:$0xff]   ;;  %v4893_v28 = vld [vmem:[#allocation7 + $0xb8] ss:$28 sps:$4 sm:$0xff]  }
 0x2ec   : > { %v1792_v37 = vadd.f32 %v1791_v30, %v1739_v29  ;;  %v1741_v38 = vadd.f32 %v1740_v34, %v949_v21  ;;  %v4898_v29 = vld [vmem:[#allocation7 + $0x3fc] ss:$28 sps:$4 sm:$0xff]   ;;  %v4901_v30 = vld [vmem:[#allocation7 + $0x84] ss:$28 sps:$4 sm:$0xff]  }
 0x2ed   : > { %v1744_v32 = vpop.f32.mrf.mxu1  ;;  %v1797_v45 = vpop.f32.mrf.mxu0  ;;  %v4899_v34 = vld [vmem:[#allocation7 + $0x80] ss:$28 sps:$4 sm:$0xff]  }
 0x2ee   : > { %v1794_v44 = vadd.f32 %v1793_v39, %v1741_v38  ;;  %3402 = vmatpush2.bf16.msra.mxu1 %v4857_v33  ;;  %v1808_v47 = vpack.c.bf16 %v1792_v37, %v1788_v42  ;;  %v1745_v52 = vadd.f32 %v1744_v32, %v945_v18  ;;  %v4896_v33 = vld [vmem:[#allocation7 + $0x3f8] ss:$28 sps:$4 sm:$0xff]   ;;  %v4907_v37 = vld [vmem:[#allocation7 + $0x4c] ss:$28 sps:$4 sm:$0xff]   ;;  %v4902_v38 = vld [vmem:[#allocation7 + $0x3c0] ss:$28 sps:$4 sm:$0xff]  }
 0x2ef   : > { %v1746_v48 = vpop.f32.mrf.mxu1  ;;  %3403 = vmatprep.subr.bf16.mxu1 %v4865_v36  ;;  %v1799_v51 = vpop.f32.mrf.mxu0  ;;  %v4904_v36 = vld [vmem:[#allocation7 + $0x3c4] ss:$28 sps:$4 sm:$0xff]   ;;  %v4910_v42 = vld [vmem:[#allocation7 + $0x38c] ss:$28 sps:$4 sm:$0xff]   ;;  %v4913_v32 = vld [vmem:[#allocation7 + $0x14] ss:$28 sps:$4 sm:$0xff]  }
 0x2f0   : > { %v1809_v50 = vpack.c.bf16 %v1794_v44, %v1790_v43  ;;  %v1747_v0 = vadd.f32 %v1746_v48, %v949_v21  ;;  %v5456_v6 = vmax.bf16 %v5197_v40, %v1808_v47  ;;  %v1798_v11 = vadd.f32 %v1797_v45, %v1745_v52  ;;  %v4905_v39 = vld [vmem:[#allocation7 + $0x48] ss:$28 sps:$4 sm:$0xff]   ;;  %v4911_v44 = vld [vmem:[#allocation7 + $0x10] ss:$28 sps:$4 sm:$0xff]   ;;  %v4917_v48 = vld [vmem:[#allocation7 + $0x358] ss:$28 sps:$4 sm:$0xff]  }
 0x2f1   : > { %v1748_v53 = vpop.f32.mrf.mxu1  ;;  %v1801_v4 = vpop.f32.mrf.mxu0  ;;  %v4908_v43 = vld [vmem:[#allocation7 + $0x388] ss:$28 sps:$4 sm:$0xff]   ;;  %v4916_v45 = vld [vmem:[#allocation7 + $0x6d4] ss:$28 sps:$4 sm:$0xff]   ;;  %v4923_v52 = vld [vmem:[#allocation7 + $0x320] ss:$28 sps:$4 sm:$0xff]  }
 0x2f2   : > { %v5453_v55 = vmax.bf16 %v5197_v40, %v1809_v50  ;;  %v1749_v1 = vadd.f32 %v1748_v53, %v945_v18  ;;  %3404 = vmatpush2.bf16.msra.mxu1 %v4863_v46  ;;  %v1800_v12 = vadd.f32 %v1799_v51, %v1747_v0  ;;  %v4919_v46 = vld [vmem:[#allocation7 + $0x35c] ss:$28 sps:$4 sm:$0xff]   ;;  %v4914_v47 = vld [vmem:[#allocation7 + $0x6d0] ss:$28 sps:$4 sm:$0xff]   ;;  %v4925_v50 = vld [vmem:[#allocation7 + $0x324] ss:$28 sps:$4 sm:$0xff]  }
 0x2f3   : > { %v1750_v7 = vpop.f32.mrf.mxu1  ;;  %3479 = vmatprep.subr.bf16.mxu1 %v4871_v49  ;;  %v1803_v61 = vpop.f32.mrf.mxu0  ;;  %v4922_v49 = vld [vmem:[#allocation7 + $0x69c] ss:$28 sps:$4 sm:$0xff]   ;;  %v4928_v53 = vld [vmem:[#allocation7 + $0x664] ss:$28 sps:$4 sm:$0xff]   ;;  %v4931_v0 = vld [vmem:[#allocation7 + $0x2ec] ss:$28 sps:$4 sm:$0xff]  }
 0x2f4   : > { %v1802_v10 = vadd.f32 %v1801_v4, %v1749_v1  ;;  %v1751_v31 = vadd.f32 %v1750_v7, %v949_v21  ;;  %3352 = vmatprep.mubr.bf16.mxu0 %v5453_v55  ;;  %v4881_v21 = vld [vmem:[#allocation7 + $0x128] ss:$28 sps:$4 sm:$0xff]   ;;  %v4920_v51 = vld [vmem:[#allocation7 + $0x698] ss:$28 sps:$4 sm:$0xff]   ;;  %v4926_v1 = vld [vmem:[#allocation7 + $0x660] ss:$28 sps:$4 sm:$0xff]  }
 0x2f5   : > { %3353 = vmatmul.mubr.bf16.vlgmr.msra.gmra.mxu0 %v5456_v6  ;;  %3406 = vmatmul.mubr.bf16.vlgmr.msra.gmra.mxu1 %v5435_v41  ;;  %v4929_v4 = vld [vmem:[#allocation7 + $0x2e8] ss:$28 sps:$4 sm:$0xff]   ;;  %v4937_v7 = vld [vmem:[#allocation7 + $0x2b4] ss:$28 sps:$4 sm:$0xff]  }
 0x2f6   : > { %v1804_v13 = vadd.f32 %v1803_v61, %v1751_v31  ;;  %3427 = vmatpush1.bf16.msra.mxu0 %v4866_v5  ;;  %3415 = vmatprep.mubr.bf16.mxu1 %v5440_v54  ;;  %v1812_v15 = vpack.c.bf16 %v1802_v10, %v1798_v11  ;;  %v4934_v5 = vld [vmem:[#allocation7 + $0x62c] ss:$28 sps:$4 sm:$0xff]   ;;  %v4940_v10 = vld [vmem:[#allocation7 + $0x5f4] ss:$28 sps:$4 sm:$0xff]   ;;  %v4943_v31 = vld [vmem:[#allocation7 + $0x27c] ss:$28 sps:$4 sm:$0xff]  }
 0x2f7   : > { %3480 = vmatpush1.bf16.msra.mxu1 %v4869_v8  ;;  %3428 = vmatprep.subr.bf16.mxu0 %v4874_v9  ;;  %v4932_v8 = vld [vmem:[#allocation7 + $0x628] ss:$28 sps:$4 sm:$0xff]   ;;  %v4935_v9 = vld [vmem:[#allocation7 + $0x2b0] ss:$28 sps:$4 sm:$0xff]   ;;  %v4941_v11 = vld [vmem:[#allocation7 + $0x278] ss:$28 sps:$4 sm:$0xff]  }
 0x2f8   : > { %v1813_v16 = vpack.c.bf16 %v1804_v13, %v1800_v12  ;;  %3481 = vmatprep.subr.bf16.mxu1 %v4877_v57  ;;  %v5466_v20 = vmax.bf16 %v5197_v40, %v1812_v15  ;;  %v4938_v57 = vld [vmem:[#allocation7 + $0x5f0] ss:$28 sps:$4 sm:$0xff]   ;;  %v4946_v61 = vld [vmem:[#allocation7 + $0x5bc] ss:$28 sps:$4 sm:$0xff]   ;;  %v4949_v12 = vld [vmem:[#allocation7 + $0x244] ss:$28 sps:$4 sm:$0xff]  }
 0x2f9   : > { %v4944_v13 = vld [vmem:[#allocation7 + $0x5b8] ss:$28 sps:$4 sm:$0xff]   ;;  %v4952_v15 = vld [vmem:[#allocation7 + $0x584] ss:$28 sps:$4 sm:$0xff]  }
 0x2fa   : > { %v5463_v18 = vmax.bf16 %v5197_v40, %v1813_v16  ;;  %3429 = vmatpush1.bf16.msra.mxu0 %v4872_v14  ;;  %v4887_v40 = vld [vmem:[#allocation7 + $0xf0] ss:$28 sps:$4 sm:$0xff]   ;;  %v4947_v14 = vld [vmem:[#allocation7 + $0x240] ss:$28 sps:$4 sm:$0xff]   ;;  %v4953_v16 = vld [vmem:[#allocation7 + $0x208] ss:$28 sps:$4 sm:$0xff]  }
 0x2fb   : > { %3482 = vmatpush1.bf16.msra.mxu1 %v4875_v2  ;;  %3430 = vmatprep.subr.bf16.mxu0 %v4880_v3  ;;  %v4955_v2 = vld [vmem:[#allocation7 + $0x20c] ss:$28 sps:$4 sm:$0xff]   ;;  %v4950_v3 = vld [vmem:[#allocation7 + $0x580] ss:$28 sps:$4 sm:$0xff]  }
 0x2fc   : > { %3362 = vmatprep.mubr.bf16.mxu0 %v5463_v18  ;;  %3483 = vmatprep.subr.bf16.mxu1 %v4883_v17  ;;  %v4958_v17 = vld [vmem:[#allocation7 + $0x54c] ss:$28 sps:$4 sm:$0xff]  }
 0x2fd   : > { %3363 = vmatmul.mubr.bf16.gmra.mxu0 %v5466_v20  ;;  %3416 = vmatmul.mubr.bf16.gmra.mxu1 %v5443_v56 }
 0x2fe   : > { %3431 = vmatpush1.bf16.msra.mxu0 %v4878_v19  ;;  %3458 = vmatprep.mubr.bf16.mxu0 %v5453_v55  ;;  %v4961_v19 = vld [vmem:[#allocation7 + $0x1d4] ss:$28 sps:$4 sm:$0xff]  }
 0x2ff   : > { %3484 = vmatpush1.bf16.msra.mxu1 %v4881_v21  ;;  %3511 = vmatprep.mubr.bf16.mxu1 %v5432_v35  ;;  %v4956_v21 = vld [vmem:[#allocation7 + $0x548] ss:$28 sps:$4 sm:$0xff]  }
 0x300   : > { %3432 = vmatprep.subr.bf16.mxu0 %v4886_v22  ;;  %3485 = vmatprep.subr.bf16.mxu1 %v4889_v23  ;;  %v4959_v22 = vld [vmem:[#allocation7 + $0x1d0] ss:$28 sps:$4 sm:$0xff]   ;;  %v4964_v23 = vld [vmem:[#allocation7 + $0x51c] ss:$28 sps:$4 sm:$0xff]  }
 0x302   : > { %3433 = vmatpush1.bf16.msra.mxu0 %v4884_v24  ;;  %v4965_v24 = vld [vmem:[#allocation7 + $0x360] ss:$28 sps:$4 sm:$0xff]  }
 0x303   : > { %3486 = vmatpush1.bf16.msra.mxu1 %v4887_v40  ;;  %3434 = vmatprep.subr.bf16.mxu0 %v4892_v25  ;;  %v4962_v40 = vld [vmem:[#allocation7 + $0x518] ss:$28 sps:$4 sm:$0xff]   ;;  %v4966_v25 = vld [vmem:[#allocation7 + $0x1a0] ss:$28 sps:$4 sm:$0xff]  }
 0x304   : > { %3487 = vmatprep.subr.bf16.mxu1 %v4895_v26  ;;  %v4969_v26 = vld [vmem:[#allocation7 + $0x4e4] ss:$28 sps:$4 sm:$0xff]  }
 0x306   : > { %3435 = vmatpush1.bf16.msra.mxu0 %v4890_v27  ;;  %v4970_v27 = vld [vmem:[#allocation7 + $0x328] ss:$28 sps:$4 sm:$0xff]  }
 0x307   : > { %3488 = vmatpush1.bf16.msra.mxu1 %v4893_v28  ;;  %3436 = vmatprep.subr.bf16.mxu0 %v4898_v29  ;;  %v4967_v28 = vld [vmem:[#allocation7 + $0x4e0] ss:$28 sps:$4 sm:$0xff]   ;;  %v4971_v29 = vld [vmem:[#allocation7 + $0x168] ss:$28 sps:$4 sm:$0xff]  }
 0x308   : > { %3489 = vmatprep.subr.bf16.mxu1 %v4901_v30  ;;  %v4974_v30 = vld [vmem:[#allocation7 + $0x4ac] ss:$28 sps:$4 sm:$0xff]  }
 0x30a   : > { %3437 = vmatpush1.bf16.msra.mxu0 %v4896_v33  ;;  %v4975_v33 = vld [vmem:[#allocation7 + $0x2f0] ss:$28 sps:$4 sm:$0xff]  }
 0x30b   : > { %3490 = vmatpush1.bf16.msra.mxu1 %v4899_v34  ;;  %3438 = vmatprep.subr.bf16.mxu0 %v4904_v36  ;;  %v4972_v34 = vld [vmem:[#allocation7 + $0x4a8] ss:$28 sps:$4 sm:$0xff]   ;;  %v4976_v36 = vld [vmem:[#allocation7 + $0x130] ss:$28 sps:$4 sm:$0xff]  }
 0x30c   : > { %3491 = vmatprep.subr.bf16.mxu1 %v4907_v37  ;;  %v4979_v37 = vld [vmem:[#allocation7 + $0x474] ss:$28 sps:$4 sm:$0xff]  }
 0x30e   : > { %3439 = vmatpush1.bf16.msra.mxu0 %v4902_v38  ;;  %v4980_v38 = vld [vmem:[#allocation7 + $0x2b8] ss:$28 sps:$4 sm:$0xff]  }
 0x30f   : > { %3492 = vmatpush1.bf16.msra.mxu1 %v4905_v39  ;;  %3440 = vmatprep.subr.bf16.mxu0 %v4910_v42  ;;  %v4977_v39 = vld [vmem:[#allocation7 + $0x470] ss:$28 sps:$4 sm:$0xff]   ;;  %v4981_v42 = vld [vmem:[#allocation7 + $0xf8] ss:$28 sps:$4 sm:$0xff]  }
 0x310   : > { %3493 = vmatprep.subr.bf16.mxu1 %v4913_v32  ;;  %v4984_v32 = vld [vmem:[#allocation7 + $0x43c] ss:$28 sps:$4 sm:$0xff]  }
 0x312   : > { %3441 = vmatpush1.bf16.msra.mxu0 %v4908_v43  ;;  %v4985_v43 = vld [vmem:[#allocation7 + $0x280] ss:$28 sps:$4 sm:$0xff]  }
 0x313   : > { %3494 = vmatpush1.bf16.msra.mxu1 %v4911_v44  ;;  %3442 = vmatprep.subr.bf16.mxu0 %v4916_v45  ;;  %v4982_v44 = vld [vmem:[#allocation7 + $0x438] ss:$28 sps:$4 sm:$0xff]   ;;  %v4986_v45 = vld [vmem:[#allocation7 + $0xc0] ss:$28 sps:$4 sm:$0xff]  }
 0x314   : > { %3495 = vmatprep.subr.bf16.mxu1 %v4919_v46  ;;  %v4989_v46 = vld [vmem:[#allocation7 + $0x404] ss:$28 sps:$4 sm:$0xff]  }
 0x316   : > { %3443 = vmatpush2.bf16.msra.mxu0 %v4914_v47  ;;  %v4990_v47 = vld [vmem:[#allocation7 + $0x248] ss:$28 sps:$4 sm:$0xff]  }
 0x317   : > { %3496 = vmatpush2.bf16.msra.mxu1 %v4917_v48  ;;  %3444 = vmatprep.subr.bf16.mxu0 %v4922_v49  ;;  %v4987_v48 = vld [vmem:[#allocation7 + $0x400] ss:$28 sps:$4 sm:$0xff]   ;;  %v4994_v49 = vld [vmem:[#allocation7 + $0x3cc] ss:$28 sps:$4 sm:$0xff]  }
 0x318   : > { %3497 = vmatprep.subr.bf16.mxu1 %v4925_v50  ;;  %v4995_v50 = vld [vmem:[#allocation7 + $0x210] ss:$28 sps:$4 sm:$0xff]  }
 0x31a   : > { %3445 = vmatpush2.bf16.msra.mxu0 %v4920_v51  ;;  %v4992_v51 = vld [vmem:[#allocation7 + $0x3c8] ss:$28 sps:$4 sm:$0xff]  }
 0x31b   : > { %3498 = vmatpush2.bf16.msra.mxu1 %v4923_v52  ;;  %3446 = vmatprep.subr.bf16.mxu0 %v4928_v53  ;;  %v4996_v52 = vld [vmem:[#allocation7 + $0x50] ss:$28 sps:$4 sm:$0xff]  }
 0x31c   : > { %3499 = vmatprep.subr.bf16.mxu1 %v4931_v0  ;;  %v4999_v53 = vld [vmem:[#allocation7 + $0x394] ss:$28 sps:$4 sm:$0xff]  }
 0x31d   : > { %v5000_v0 = vld [vmem:[#allocation7 + $0x1d8] ss:$28 sps:$4 sm:$0xff]  }
 0x31e   : > { %3447 = vmatpush2.bf16.msra.mxu0 %v4926_v1  ;;  %v4997_v1 = vld [vmem:[#allocation7 + $0x390] ss:$28 sps:$4 sm:$0xff]  }
 0x31f   : > { %3500 = vmatpush2.bf16.msra.mxu1 %v4929_v4  ;;  %3448 = vmatprep.subr.bf16.mxu0 %v4934_v5  ;;  %v5001_v4 = vld [vmem:[#allocation7 + $0x18] ss:$28 sps:$4 sm:$0xff]  }
 0x320   : > { %3501 = vmatprep.subr.bf16.mxu1 %v4937_v7  ;;  %v5004_v5 = vld [vmem:[#allocation7 + $0x6dc] ss:$28 sps:$4 sm:$0xff]  }
 0x321   : > { %v5002_v7 = vld [vmem:[#allocation7 + $0x6d8] ss:$28 sps:$4 sm:$0xff]  }
 0x322   : > { %3449 = vmatpush2.bf16.msra.mxu0 %v4932_v8  ;;  %v5007_v8 = vld [vmem:[#allocation7 + $0x6a4] ss:$28 sps:$4 sm:$0xff]  }
 0x323   : > { %3502 = vmatpush2.bf16.msra.mxu1 %v4935_v9  ;;  %3450 = vmatprep.subr.bf16.mxu0 %v4940_v10  ;;  %v5005_v9 = vld [vmem:[#allocation7 + $0x6a0] ss:$28 sps:$4 sm:$0xff]   ;;  %v5010_v10 = vld [vmem:[#allocation7 + $0x66c] ss:$28 sps:$4 sm:$0xff]  }
 0x324   : > { %3503 = vmatprep.subr.bf16.mxu1 %v4943_v31  ;;  %v5008_v31 = vld [vmem:[#allocation7 + $0x668] ss:$28 sps:$4 sm:$0xff]  }
 0x326   : > { %3451 = vmatpush2.bf16.msra.mxu0 %v4938_v57  ;;  %v5013_v57 = vld [vmem:[#allocation7 + $0x634] ss:$28 sps:$4 sm:$0xff]  }
 0x327   : > { %3504 = vmatpush2.bf16.msra.mxu1 %v4941_v11  ;;  %3452 = vmatprep.subr.bf16.mxu0 %v4946_v61  ;;  %v5011_v11 = vld [vmem:[#allocation7 + $0x630] ss:$28 sps:$4 sm:$0xff]   ;;  %v5016_v61 = vld [vmem:[#allocation7 + $0x5fc] ss:$28 sps:$4 sm:$0xff]  }
 0x328   : > { %3505 = vmatprep.subr.bf16.mxu1 %v4949_v12  ;;  %v5014_v12 = vld [vmem:[#allocation7 + $0x5f8] ss:$28 sps:$4 sm:$0xff]  }
 0x32a   : > { %3453 = vmatpush2.bf16.msra.mxu0 %v4944_v13  ;;  %v5019_v13 = vld [vmem:[#allocation7 + $0x5c4] ss:$28 sps:$4 sm:$0xff]  }
 0x32b   : > { %3506 = vmatpush2.bf16.msra.mxu1 %v4947_v14  ;;  %3454 = vmatprep.subr.bf16.mxu0 %v4952_v15  ;;  %v5020_v14 = vld [vmem:[#allocation7 + $0x588] ss:$28 sps:$4 sm:$0xff]   ;;  %v5025_v15 = vld [vmem:[#allocation7 + $0x554] ss:$28 sps:$4 sm:$0xff]  }
 0x32c   : > { %3507 = vmatprep.subr.bf16.mxu1 %v4955_v2  ;;  %v5023_v2 = vld [vmem:[#allocation7 + $0x550] ss:$28 sps:$4 sm:$0xff]  }
 0x32e   : > { %3455 = vmatpush2.bf16.msra.mxu0 %v4950_v3  ;;  %v5026_v3 = vld [vmem:[#allocation7 + $0x6e0] ss:$28 sps:$4 sm:$0xff]  }
 0x32f   : > { %3508 = vmatpush2.bf16.msra.mxu1 %v4953_v16  ;;  %3456 = vmatprep.subr.bf16.mxu0 %v4958_v17  ;;  %v5028_v16 = vld [vmem:[#allocation7 + $0x6a8] ss:$28 sps:$4 sm:$0xff]  }
 0x330   : > { %3509 = vmatprep.subr.bf16.mxu1 %v4961_v19  ;;  %v5029_v17 = vld [vmem:[#allocation7 + $0x4e8] ss:$28 sps:$4 sm:$0xff]   ;;  %v5030_v19 = vld [vmem:[#allocation7 + $0x670] ss:$28 sps:$4 sm:$0xff]  }
 0x332   : > { %3457 = vmatpush2.bf16.msra.mxu0 %v4956_v21  ;;  %v5031_v21 = vld [vmem:[#allocation7 + $0x4b0] ss:$28 sps:$4 sm:$0xff]  }
 0x333   : > { %3510 = vmatpush2.bf16.msra.mxu1 %v4959_v22  ;;  %3532 = vmatprep.subr.bf16.mxu0 %v4964_v23  ;;  %v5032_v22 = vld [vmem:[#allocation7 + $0x638] ss:$28 sps:$4 sm:$0xff]  }
 0x334   : > { %4337 = vmatprep.subr.bf16.mxu1 %v4965_v24  ;;  %v5033_v23 = vld [vmem:[#allocation7 + $0x478] ss:$28 sps:$4 sm:$0xff]   ;;  %v5034_v24 = vld [vmem:[#allocation7 + $0x600] ss:$28 sps:$4 sm:$0xff]  }
 0x335   : > { %3459 = vmatmul.mubr.bf16.vlgmr.msra.gmra.mxu0 %v5456_v6 }
 0x336   : > { %3468 = vmatprep.mubr.bf16.mxu0 %v5463_v18  ;;  %3512 = vmatmul.mubr.bf16.vlgmr.msra.gmra.mxu1 %v5435_v41 }
 0x337   : > { %3533 = vmatpush1.bf16.msra.mxu0 %v4962_v40  ;;  %3521 = vmatprep.mubr.bf16.mxu1 %v5440_v54  ;;  %v5035_v40 = vld [vmem:[#allocation7 + $0x440] ss:$28 sps:$4 sm:$0xff]  }
 0x338   : > { %4338 = vmatpush3.bf16.msra.mxu1 %v4966_v25  ;;  %3534 = vmatprep.subr.bf16.mxu0 %v4969_v26  ;;  %v5036_v25 = vld [vmem:[#allocation7 + $0x5c8] ss:$28 sps:$4 sm:$0xff]  }
 0x339   : > { %4339 = vmatprep.subr.bf16.mxu1 %v4970_v27  ;;  %v5037_v26 = vld [vmem:[#allocation7 + $0x408] ss:$28 sps:$4 sm:$0xff]   ;;  %v5038_v27 = vld [vmem:[#allocation7 + $0x590] ss:$28 sps:$4 sm:$0xff]  }
 0x33b   : > { %3535 = vmatpush1.bf16.msra.mxu0 %v4967_v28  ;;  %v5039_v28 = vld [vmem:[#allocation7 + $0x3d0] ss:$28 sps:$4 sm:$0xff]  }
 0x33c   : > { %4340 = vmatpush3.bf16.msra.mxu1 %v4971_v29  ;;  %3536 = vmatprep.subr.bf16.mxu0 %v4974_v30  ;;  %v5040_v29 = vld [vmem:[#allocation7 + $0x558] ss:$28 sps:$4 sm:$0xff]  }
 0x33d   : > { %3469 = vmatmul.mubr.bf16.gmra.mxu0 %v5466_v20  ;;  %4341 = vmatprep.subr.bf16.mxu1 %v4975_v33  ;;  %v5041_v30 = vld [vmem:[#allocation7 + $0x398] ss:$28 sps:$4 sm:$0xff]  }
 0x33e   : > { %3522 = vmatmul.mubr.bf16.gmra.mxu1 %v5443_v56  ;;  %3564 = vmatprep.mubr.bf16.mxu0 %v5453_v55 }
 0x33f   : > { %3537 = vmatpush1.bf16.msra.mxu0 %v4972_v34  ;;  %3617 = vmatprep.mubr.bf16.mxu1 %v5432_v35  ;;  %v4991_v35 = vld [vmem:[#allocation7 + $0x88] ss:$28 sps:$4 sm:$0xff]  }
 0x340   : > { %4342 = vmatpush3.bf16.msra.mxu1 %v4976_v36  ;;  %3538 = vmatprep.subr.bf16.mxu0 %v4979_v37  ;;  %v5494_v36 = vld [vmem:[%s5590_s8] sm:$0xff] }
 0x341   : > { %4343 = vmatprep.subr.bf16.mxu1 %v4980_v38  ;;  %v2083_v38 = vrot.slane %v5494_v36, %v5372_v59 }
 0x343   : > { %3539 = vmatpush1.bf16.msra.mxu0 %v4977_v39  ;;  %v2087_v39 = vrot.slane %v5494_v36, %v5381_v62 }
 0x344   : > { %4344 = vmatpush3.bf16.msra.mxu1 %v4981_v42  ;;  %3540 = vmatprep.subr.bf16.mxu0 %v4984_v32 }
 0x345   : > { %4345 = vmatprep.subr.bf16.mxu1 %v4985_v43 }
 0x347   : > { %3541 = vmatpush1.bf16.msra.mxu0 %v4982_v44 }
 0x348   : > { %4346 = vmatpush3.bf16.msra.mxu1 %v4986_v45  ;;  %3542 = vmatprep.subr.bf16.mxu0 %v4989_v46 }
 0x349   : > { %4347 = vmatprep.subr.bf16.mxu1 %v4990_v47 }
 0x34b   : > { %3543 = vmatpush1.bf16.msra.mxu0 %v4987_v48 }
 0x34c   : > { %4348 = vmatpush3.bf16.msra.mxu1 %v4991_v35  ;;  %3544 = vmatprep.subr.bf16.mxu0 %v4994_v49 }
 0x34d   : > { %4349 = vmatprep.subr.bf16.mxu1 %v4995_v50 }
 0x34f   : > { %3545 = vmatpush1.bf16.msra.mxu0 %v4992_v51 }
 0x350   : > { %4350 = vmatpush3.bf16.msra.mxu1 %v4996_v52  ;;  %3546 = vmatprep.subr.bf16.mxu0 %v4999_v53 }
 0x351   : > { %4351 = vmatprep.subr.bf16.mxu1 %v5000_v0 }
 0x353   : > { %3547 = vmatpush1.bf16.msra.mxu0 %v4997_v1 }
 0x354   : > { %4352 = vmatpush3.bf16.msra.mxu1 %v5001_v4  ;;  %3548 = vmatprep.subr.bf16.mxu0 %v5004_v5 }
 0x357   : > { %3549 = vmatpush2.bf16.msra.mxu0 %v5002_v7  ;;  %3618 = vmatmul.mubr.bf16.vlgmr.msra.gmra.mxu1 %v5435_v41  ;;  %v5017_v41 = vld [vmem:[#allocation7 + $0x5c0] ss:$28 sps:$4 sm:$0xff]  }
 0x358   : > { %3625 = vmatprep.mubr.bf16.mxu1 %v5440_v54  ;;  %3550 = vmatprep.subr.bf16.mxu0 %v5007_v8  ;;  %v5022_v54 = vld [vmem:[#allocation7 + $0x58c] ss:$28 sps:$4 sm:$0xff]  }
 0x35b   : > { %3551 = vmatpush2.bf16.msra.mxu0 %v5005_v9 }
 0x35c   : > { %3552 = vmatprep.subr.bf16.mxu0 %v5010_v10 }
 0x35f   : > { %3553 = vmatpush2.bf16.msra.mxu0 %v5008_v31  ;;  %3626 = vmatmul.mubr.bf16.gmra.mxu1 %v5443_v56  ;;  %v5027_v56 = vld [vmem:[#allocation7 + $0x520] ss:$28 sps:$4 sm:$0xff]  }
 0x360   : > { %3554 = vmatprep.subr.bf16.mxu0 %v5013_v57 }
 0x363   : > { %3555 = vmatpush2.bf16.msra.mxu0 %v5011_v11 }
 0x364   : > { %3556 = vmatprep.subr.bf16.mxu0 %v5016_v61 }
 0x367   : > { %3557 = vmatpush2.bf16.msra.mxu0 %v5014_v12 }
 0x368   : > { %3558 = vmatprep.subr.bf16.mxu0 %v5019_v13 }
 0x36b   : > { %3559 = vmatpush2.bf16.msra.mxu0 %v5017_v41 }
 0x36c   : > { %3560 = vmatprep.subr.bf16.mxu0 %v5022_v54 }
 0x36f   : > { %3561 = vmatpush2.bf16.msra.mxu0 %v5020_v14 }
 0x370   : > { %3562 = vmatprep.subr.bf16.mxu0 %v5025_v15  ;;  %v2091_v15 = vrot.slane %v5494_v36, %v5375_v60 }
 0x373   : > { %3563 = vmatpush2.bf16.msra.mxu0 %v5023_v2  ;;  %v2095_v2 = vrot.slane %v5494_v36, %v5384_v63 }
 0x374   : > { %4365 = vmatprep.subr.bf16.mxu0 %v5026_v3 }
 0x376   : > { %3565 = vmatmul.mubr.bf16.vlgmr.msra.gmra.mxu0 %v5456_v6 }
 0x377   : > { %3574 = vmatprep.mubr.bf16.mxu0 %v5463_v18  ;;  %4366 = vmatpush3.bf16.msra.mxu0 %v5027_v56 }
 0x378   : > { %4367 = vmatprep.subr.bf16.mxu0 %v5028_v16 }
 0x37b   : > { %4368 = vmatpush3.bf16.msra.mxu0 %v5029_v17 }
 0x37c   : > { %4369 = vmatprep.subr.bf16.mxu0 %v5030_v19 }
 0x37e   : > { %3575 = vmatmul.mubr.bf16.gmra.mxu0 %v5466_v20 }
 0x37f   : > { %4370 = vmatpush3.bf16.msra.mxu0 %v5031_v21  ;;  %3666 = vmatprep.mubr.bf16.mxu0 %v5453_v55  ;;  %v3301_v55 = vpop.f32.mrf.mxu1 }
 0x380   : > { %4371 = vmatprep.subr.bf16.mxu0 %v5032_v22 }
 0x381   : > { %v3303_v33 = vpop.f32.mrf.mxu1 }
 0x382   : > { %v3304_v42 = vadd.f32 %v3303_v33, %v2087_v39 }
 0x383   : > { %4372 = vmatpush3.bf16.msra.mxu0 %v5033_v23  ;;  %v3305_v34 = vpop.f32.mrf.mxu1 }
 0x384   : > { %4373 = vmatprep.subr.bf16.mxu0 %v5034_v24  ;;  %v3306_v47 = vadd.f32 %v3305_v34, %v2083_v38 }
 0x385   : > { %v3307_v37 = vpop.f32.mrf.mxu1 }
 0x386   : > { %v3308_v48 = vadd.f32 %v3307_v37, %v2087_v39 }
 0x387   : > { %4374 = vmatpush3.bf16.msra.mxu0 %v5035_v40 }
 0x388   : > { %4375 = vmatprep.subr.bf16.mxu0 %v5036_v25 }
 0x38b   : > { %4376 = vmatpush3.bf16.msra.mxu0 %v5037_v26 }
 0x38c   : > { %4377 = vmatprep.subr.bf16.mxu0 %v5038_v27 }
 0x38f   : > { %4378 = vmatpush3.bf16.msra.mxu0 %v5039_v28 }
 0x390   : > { %4379 = vmatprep.subr.bf16.mxu0 %v5040_v29 }
 0x393   : > { %4380 = vmatpush3.bf16.msra.mxu0 %v5041_v30 }
 0x396   : > { %3667 = vmatmul.mubr.bf16.vlgmr.msra.gmra.mxu0 %v5456_v6  ;;  %v3311_v6 = vpop.f32.mrf.mxu1 }
 0x397   : > { %3674 = vmatprep.mubr.bf16.mxu0 %v5463_v18  ;;  %v3312_v52 = vadd.f32 %v3311_v6, %v2083_v38 }
 0x398   : > { %v3313_v32 = vpop.f32.mrf.mxu1 }
 0x399   : > { %v3314_v53 = vadd.f32 %v3313_v32, %v2087_v39 }
 0x39a   : > { %v3315_v49 = vpop.f32.mrf.mxu1 }
 0x39b   : > { %v3316_v9 = vadd.f32 %v3315_v49, %v2083_v38  ;;  %v2102_v49 = vsub.s32 5, %v5369_v58 }
 0x39c   : > { %v3317_v1 = vpop.f32.mrf.mxu1 }
 0x39d   : > { %v3318_v10 = vadd.f32 %v3317_v1, %v2087_v39 }
 0x39e   : > { %3675 = vmatmul.mubr.bf16.gmra.mxu0 %v5466_v20  ;;  %v3302_v20 = vadd.f32 %v3301_v55, %v2083_v38 }
 0x3b5   : > { %v3354_v18 = vpop.f32.mrf.mxu0  ;;  %v3407_v13 = vpop.f32.mrf.mxu1 }
 0x3b6   : > { %v3355_v44 = vadd.f32 %v3354_v18, %v3302_v20  ;;  %v3408_v16 = vadd.f32 %v3407_v13, %v2091_v15 }
 0x3b7   : > { %v3356_v43 = vpop.f32.mrf.mxu0  ;;  %v3409_v41 = vpop.f32.mrf.mxu1 }
 0x3b8   : > { %v3357_v45 = vadd.f32 %v3356_v43, %v3304_v42  ;;  %v3410_v17 = vadd.f32 %v3409_v41, %v2095_v2 }
 0x3b9   : > { %v3358_v46 = vpop.f32.mrf.mxu0  ;;  %v3411_v54 = vpop.f32.mrf.mxu1 }
 0x3ba   : > { %v4317_v35 = vpack.c.bf16 %v3357_v45, %v3355_v44  ;;  %v3359_v62 = vadd.f32 %v3358_v46, %v3306_v47  ;;  %v3412_v40 = vadd.f32 %v3411_v54, %v2091_v15 }
 0x3bb   : > { %v3360_v59 = vpop.f32.mrf.mxu0  ;;  %v3413_v14 = vpop.f32.mrf.mxu1 }
 0x3bc   : > { %3771 = vst [vmem:[%s5503_s23] sm:$0xff] %v4317_v35  ;;  %v3361_v50 = vadd.f32 %v3360_v59, %v3308_v48  ;;  %v3414_v25 = vadd.f32 %v3413_v14, %v2095_v2  ;;  %v2098_v35 = vsub.s32 4, %v5369_v58 }
 0x3bd   : > { %v3364_v51 = vpop.f32.mrf.mxu0  ;;  %v3417_v3 = vpop.f32.mrf.mxu1 }
 0x3be   : > { %v4321_v0 = vpack.c.bf16 %v3361_v50, %v3359_v62  ;;  %v3365_v5 = vadd.f32 %v3364_v51, %v3312_v52  ;;  %v3418_v30 = vadd.f32 %v3417_v3, %v2091_v15  ;;  %v2099_v62 = vrot.slane %v5494_v36, %v2098_v35 }
 0x3bf   : > { %v3366_v4 = vpop.f32.mrf.mxu0  ;;  %v3419_v19 = vpop.f32.mrf.mxu1  ;;  %v2103_v50 = vrot.slane %v5494_v36, %v2102_v49 }
 0x3c0   : > { %3775 = vst [vmem:[%s5503_s23 + $0x1c] sm:$0xff] %v4321_v0  ;;  %v3367_v7 = vadd.f32 %v3366_v4, %v3314_v53  ;;  %v3420_v55 = vadd.f32 %v3419_v19, %v2095_v2 }
 0x3c1   : > { %v3368_v8 = vpop.f32.mrf.mxu0  ;;  %v3421_v27 = vpop.f32.mrf.mxu1 }
 0x3c2   : > { %v4325_v31 = vpack.c.bf16 %v3367_v7, %v3365_v5  ;;  %v3369_v11 = vadd.f32 %v3368_v8, %v3316_v9  ;;  %v3422_v18 = vadd.f32 %v3421_v27, %v2091_v15 }
 0x3c3   : > { %v3370_v57 = vpop.f32.mrf.mxu0  ;;  %v3423_v34 = vpop.f32.mrf.mxu1 }
 0x3c4   : > { %3779 = vst [vmem:[%s5503_s23 + $0x38] sm:$0xff] %v4325_v31  ;;  %v3371_v61 = vadd.f32 %v3370_v57, %v3318_v10  ;;  %v3424_v20 = vadd.f32 %v3423_v34, %v2095_v2 }
 0x3c6   : > { %v4329_v12 = vpack.c.bf16 %v3371_v61, %v3369_v11 }
 0x3c8   : > { %3783 = vst [vmem:[%s5503_s23 + $0x54] sm:$0xff] %v4329_v12 }
 0x3f5   : > { %v3460_v56 = vpop.f32.mrf.mxu0 }
 0x3f6   : > { %v3461_v22 = vadd.f32 %v3460_v56, %v3408_v16  ;;  %v3513_v46 = vpop.f32.mrf.mxu1 }
 0x3f7   : > { %v3462_v21 = vpop.f32.mrf.mxu0  ;;  %v3514_v53 = vadd.f32 %v3513_v46, %v2099_v62 }
 0x3f8   : > { %v3463_v23 = vadd.f32 %v3462_v21, %v3410_v17  ;;  %v3515_v47 = vpop.f32.mrf.mxu1 }
 0x3f9   : > { %v3464_v24 = vpop.f32.mrf.mxu0  ;;  %v3516_v0 = vadd.f32 %v3515_v47, %v2103_v50 }
 0x3fa   : > { %v4318_v26 = vpack.c.bf16 %v3463_v23, %v3461_v22  ;;  %v3465_v60 = vadd.f32 %v3464_v24, %v3412_v40  ;;  %v3517_v48 = vpop.f32.mrf.mxu1 }
 0x3fb   : > { %v3466_v28 = vpop.f32.mrf.mxu0  ;;  %v3518_v9 = vadd.f32 %v3517_v48, %v2099_v62 }
 0x3fc   : > { %3772 = vst [vmem:[%s5503_s23 + $0x8] sm:$0xff] %v4318_v26  ;;  %v3467_v29 = vadd.f32 %v3466_v28, %v3414_v25  ;;  %v3519_v59 = vpop.f32.mrf.mxu1 }
 0x3fd   : > { %v3470_v63 = vpop.f32.mrf.mxu0  ;;  %v3520_v10 = vadd.f32 %v3519_v59, %v2103_v50 }
 0x3fe   : > { %v4322_v33 = vpack.c.bf16 %v3467_v29, %v3465_v60  ;;  %v3471_v38 = vadd.f32 %v3470_v63, %v3418_v30  ;;  %v3523_v51 = vpop.f32.mrf.mxu1  ;;  %v2106_v60 = vsub.s32 6, %v5369_v58 }
 0x3ff   : > { %v3472_v37 = vpop.f32.mrf.mxu0  ;;  %v3524_v41 = vadd.f32 %v3523_v51, %v2099_v62 }
 0x400   : > { %3776 = vst [vmem:[%s5503_s23 + $0x24] sm:$0xff] %v4322_v33  ;;  %v3473_v39 = vadd.f32 %v3472_v37, %v3420_v55  ;;  %v3525_v1 = vpop.f32.mrf.mxu1  ;;  %v2107_v63 = vrot.slane %v5494_v36, %v2106_v60 }
 0x401   : > { %v3474_v6 = vpop.f32.mrf.mxu0  ;;  %v3526_v54 = vadd.f32 %v3525_v1, %v2103_v50 }
 0x402   : > { %v4326_v42 = vpack.c.bf16 %v3473_v39, %v3471_v38  ;;  %v3475_v43 = vadd.f32 %v3474_v6, %v3422_v18  ;;  %v3527_v57 = vpop.f32.mrf.mxu1 }
 0x403   : > { %v3476_v32 = vpop.f32.mrf.mxu0  ;;  %v3528_v19 = vadd.f32 %v3527_v57, %v2099_v62 }
 0x404   : > { %3780 = vst [vmem:[%s5503_s23 + $0x40] sm:$0xff] %v4326_v42  ;;  %v3477_v44 = vadd.f32 %v3476_v32, %v3424_v20  ;;  %v3529_v15 = vpop.f32.mrf.mxu1 }
 0x405   : > { %v3530_v21 = vadd.f32 %v3529_v15, %v2103_v50 }
 0x406   : > { %v4330_v45 = vpack.c.bf16 %v3477_v44, %v3475_v43 }
 0x408   : > { %3784 = vst [vmem:[%s5503_s23 + $0x5c] sm:$0xff] %v4330_v45 }
 0x417   : > { %v4353_v16 = vpop.f32.mrf.mxu1 }
 0x419   : > { %v4354_v25 = vpop.f32.mrf.mxu1 }
 0x41a   : > { %v4355_v30 = vadd.f32 %v4354_v25, %v4353_v16 }
 0x41b   : > { %v4356_v27 = vpop.f32.mrf.mxu1 }
 0x41c   : > { %v3620_v37 = vadd.f32 %v4355_v30, %v2107_v63 }
 0x41d   : > { %v4357_v28 = vpop.f32.mrf.mxu1 }
 0x41e   : > { %v4358_v38 = vadd.f32 %v4357_v28, %v4356_v27 }
 0x41f   : > { %v4359_v29 = vpop.f32.mrf.mxu1 }
 0x420   : > { %v3623_v32 = vadd.f32 %v4358_v38, %v2107_v63 }
 0x421   : > { %v4360_v55 = vpop.f32.mrf.mxu1 }
 0x422   : > { %v4361_v43 = vadd.f32 %v4360_v55, %v4359_v29 }
 0x423   : > { %v4362_v6 = vpop.f32.mrf.mxu1 }
 0x424   : > { %v3628_v48 = vadd.f32 %v4361_v43, %v2107_v63 }
 0x425   : > { %v4363_v45 = vpop.f32.mrf.mxu1 }
 0x426   : > { %v4364_v35 = vadd.f32 %v4363_v45, %v4362_v6 }
 0x436   : > { %v3566_v52 = vpop.f32.mrf.mxu0 }
 0x437   : > { %v3567_v5 = vadd.f32 %v3566_v52, %v3514_v53  ;;  %v3631_v52 = vadd.f32 %v4364_v35, %v2107_v63 }
 0x438   : > { %v3568_v4 = vpop.f32.mrf.mxu0 }
 0x439   : > { %v3569_v7 = vadd.f32 %v3568_v4, %v3516_v0 }
 0x43a   : > { %v3570_v8 = vpop.f32.mrf.mxu0 }
 0x43b   : > { %v4319_v31 = vpack.c.bf16 %v3569_v7, %v3567_v5  ;;  %v3571_v61 = vadd.f32 %v3570_v8, %v3518_v9 }
 0x43c   : > { %v3572_v11 = vpop.f32.mrf.mxu0 }
 0x43d   : > { %3773 = vst [vmem:[%s5503_s23 + $0x10] sm:$0xff] %v4319_v31  ;;  %v3573_v12 = vadd.f32 %v3572_v11, %v3520_v10 }
 0x43e   : > { %v3576_v13 = vpop.f32.mrf.mxu0 }
 0x43f   : > { %v4323_v14 = vpack.c.bf16 %v3573_v12, %v3571_v61  ;;  %v3577_v3 = vadd.f32 %v3576_v13, %v3524_v41 }
 0x440   : > { %v3578_v2 = vpop.f32.mrf.mxu0 }
 0x441   : > { %3777 = vst [vmem:[%s5503_s23 + $0x2c] sm:$0xff] %v4323_v14  ;;  %v3579_v56 = vadd.f32 %v3578_v2, %v3526_v54 }
 0x442   : > { %v3580_v17 = vpop.f32.mrf.mxu0 }
 0x443   : > { %v4327_v22 = vpack.c.bf16 %v3579_v56, %v3577_v3  ;;  %v3581_v24 = vadd.f32 %v3580_v17, %v3528_v19 }
 0x444   : > { %v3582_v23 = vpop.f32.mrf.mxu0 }
 0x445   : > { %3781 = vst [vmem:[%s5503_s23 + $0x48] sm:$0xff] %v4327_v22  ;;  %v3583_v40 = vadd.f32 %v3582_v23, %v3530_v21 }
 0x447   : > { %v4331_v26 = vpack.c.bf16 %v3583_v40, %v3581_v24 }
 0x449   : > { %3785 = vst [vmem:[%s5503_s23 + $0x64] sm:$0xff] %v4331_v26 }
 0x456   : > { %v4381_v33 = vpop.f32.mrf.mxu0 }
 0x458   : > { %v4382_v34 = vpop.f32.mrf.mxu0 }
 0x459   : > { %v4383_v39 = vadd.f32 %v4382_v34, %v4381_v33 }
 0x45a   : > { %v4384_v18 = vpop.f32.mrf.mxu0 }
 0x45b   : > { %v3669_v20 = vadd.f32 %v4383_v39, %v3620_v37 }
 0x45c   : > { %v4385_v42 = vpop.f32.mrf.mxu0 }
 0x45d   : > { %v4320_v58 = vpack.c.bf16 %v3669_v20, %v3669_v20  ;;  %v4386_v44 = vadd.f32 %v4385_v42, %v4384_v18 }
 0x45e   : > { %v4387_v36 = vpop.f32.mrf.mxu0 }
 0x45f   : > { %3774 = vst [vmem:[%s5503_s23 + $0x18] sm:$0xf] %v4320_v58  ;;  %v3672_v46 = vadd.f32 %v4386_v44, %v3623_v32 }
 0x460   : > { %v4388_v47 = vpop.f32.mrf.mxu0 }
 0x461   : > { %v4324_v49 = vpack.c.bf16 %v3672_v46, %v3672_v46  ;;  %v4389_v59 = vadd.f32 %v4388_v47, %v4387_v36 }
 0x462   : > { %v4390_v62 = vpop.f32.mrf.mxu0 }
 0x463   : > { %3778 = vst [vmem:[%s5503_s23 + $0x34] sm:$0xf] %v4324_v49  ;;  %v3677_v50 = vadd.f32 %v4389_v59, %v3628_v48 }
 0x464   : > { %v4391_v51 = vpop.f32.mrf.mxu0 }
 0x465   : > { %v4328_v53 = vpack.c.bf16 %v3677_v50, %v3677_v50  ;;  %v4392_v0 = vadd.f32 %v4391_v51, %v4390_v62 }
 0x467   : > { %3782 = vst [vmem:[%s5503_s23 + $0x50] sm:$0xf] %v4328_v53  ;;  %v3680_v1 = vadd.f32 %v4392_v0, %v3631_v52 }
 0x469   : > { %v4332_v4 = vpack.c.bf16 %v3680_v1, %v3680_v1 }
 0x46b   : > { %3786 = vst [vmem:[%s5503_s23 + $0x6c] sm:$0xf] %v4332_v4 }
 0x46c   : > { %5133 = shalt.err (!%p5130_p0)
}
 0x46d   : > { %s5134_s16 = scalar_lea.hbm %s5535_s24, 1792  ;;  %s5138_s17 = scalar_lea.hbm %s5591_s9, 3584 }
 0x46e   : > { %p5135_p6 = scmp.ne.s32.totalorder %s5535_s24, %s5134_s16  ;;  %p5139_p5 = scmp.lt.s32.totalorder %s5535_s24, %s5591_s9 }
 0x46f   : > { %p5140_p1 = scmp.lt.s32.totalorder %s5138_s17, %s5134_s16 }
 0x470   : > { %p5136_p9 = pnand %p5135_p6, %p5602_p12 }
 0x471   : > { %p5141_p3 = por %p5140_p1, %p5139_p5 }
 0x472   : > { %p5137_p13 = pneg %p5136_p9 }
 0x474   : > { %p5142_p10 = pnand %p5141_p3, %p5137_p13 }
 0x476   : > { %5145 = shalt.err (!%p5142_p10)
}
 0x477   : > { %s5199_s26 = smov 448   ;;  %s5200_s28 = smov 28  }
 0x478   : > { %4415 = dma.vmem_to_hbm [thread:$0]  (%p5602_p12), %s5537_s22, 1792, %s5535_s24, %s5542_s13, %s5199_s26, %s5199_s26, %s5200_s28  }
 0x479 PF: > { %p4437_p2 = scmp.ge.s32.totalorder %s5188_s12, 2  ;;  %s3817_s21 = sand.u32 1, %s5176_s30  }
 0x47a   : > { %p5603_p4 = scmp.ne.s32.totalorder %s5595_s20, 0  ;;  %s3818_s14 = scalar_lea.sflag [#allocation4], %s3817_s21 }
 0x47c   : > { %p4428_p7 = pnand %p4437_p2, %p5603_p4 }
 0x47e   : > { %p4429_p8 = pneg %p4428_p7 }
 0x480   : > { %5171 = dma.done.wait (%p4429_p8), %s3818_s14, 1792  }
 0x481   : > { %5173 = vsyncadd (%p4429_p8), %s3818_s14, 4294965504  ;;  %p21_p11 = scmp.ge.s32.totalorder %s5276_s15, 4   ;;  %s5604_s30 = smov %s5180_s10 }
 0x482   : > { %s5605_s10 = smov %s5184_s11  ;;  %s5606_s11 = smov %s5287_s18 }
 0x483   : > { %s5607_s12 = smov %s5276_s15  ;;  %23 = sbr.rel (!%p21_p11) target bundleno = 5 (0x5), region = 104 }
 0x488   :  { %3823 = vsyncpa [#allocation3], 1 }
 0x489   :  { %3825 = vsyncpa [#allocation3 + $0x1], 1 }
 0x48a   :  { %3826 = vsyncpa [#allocation6], 1 }
 0x48b   :  { %3827 = vsyncpa [#allocation4], 1 }
 0x48c   :  { %3829 = vsyncpa [#allocation4 + $0x1], 1 }

</bundles_post_ra>
